<compile_context>
chip_gen: v7x
topology: tpu7x:2x2x1
jax: 0.10.0
libtpu: 0.0.40
codegen_flags: <defaults>
</compile_context>

<pallas_src>
import functools
import math

import jax
import jax.numpy as jnp
from jax.experimental import pallas as pl
from jax.experimental.pallas import tpu as pltpu

EPS = 1e-5
NB_HIDDEN = 32


# ---------------------------------------------------------------------------
# Shared in-kernel helper: conv-as-matmul + BN(train) + ReLU + 2x2 max-pool
# ---------------------------------------------------------------------------
def _conv_bn_relu_pool(patches, w, bias, gamma, beta, pool_rows):
    # One MXU matmul covers both branches (block-diagonal weight).
    y = jnp.dot(patches, w, preferred_element_type=jnp.float32) + bias
    # BatchNorm, PyTorch training-mode: per-lane biased batch stats, single pass.
    mean = jnp.mean(y, axis=0, keepdims=True)
    var = jnp.maximum(jnp.mean(y * y, axis=0, keepdims=True) - mean * mean, 0.0)
    y = (y - mean) * jax.lax.rsqrt(var + EPS) * gamma + beta
    y = jnp.maximum(y, 0.0)
    # 2x2 max-pool: rows are ordered (pool_dy, pool_dx, <output order>), so the
    # pool is a max over 4 contiguous row blocks of size pool_rows.
    r = pool_rows
    return jnp.maximum(jnp.maximum(y[0 * r:1 * r], y[1 * r:2 * r]),
                       jnp.maximum(y[2 * r:3 * r], y[3 * r:4 * r]))


# ---------------------------------------------------------------------------
# Pallas kernels
# ---------------------------------------------------------------------------
def _stage1_kernel(p_ref, w_ref, b_ref, g_ref, beta_ref, o_ref, *, pool_rows):
    # conv1(both branches) + BN1 + ReLU + pool1 -> (B*36, 32), rows (b, ph, pw)
    o_ref[...] = _conv_bn_relu_pool(
        p_ref[...], w_ref[...], b_ref[...], g_ref[...], beta_ref[...], pool_rows
    ).astype(o_ref.dtype)


def _stage2_kernel(p_ref, w2_ref, b2_ref, g2_ref, beta2_ref,
                   w1f_ref, b1f_ref, w2f_ref, b2f_ref,
                   w3_ref, b3_ref, w4_ref, b4_ref,
                   digits_ref, out_ref, *, batch):
    # conv2(both branches) + BN2 + ReLU + pool2; pooled rows ordered (q, b)
    # with q = h*2 + w over the 2x2 output grid; lanes = 64 packed channels.
    pooled = _conv_bn_relu_pool(
        p_ref[...], w2_ref[...], b2_ref[...], g2_ref[...], beta2_ref[...],
        4 * batch)
    # fc1 (== .view(-1,128) @ fc1_w.T): sum over the 4 spatial positions q,
    # each a small lane-packed matmul with block-diagonal weights.
    h = b1f_ref[...]
    for q in range(4):
        h = h + jnp.dot(pooled[q * batch:(q + 1) * batch, :], w1f_ref[q],
                        preferred_element_type=jnp.float32)
    h = jnp.maximum(h, 0.0)
    # fc2, lane-packed: lanes 0..9 = digit1, 10..19 = digit2 (torch.cat order).
    digits = jnp.dot(h, w2f_ref[...], preferred_element_type=jnp.float32) + b2f_ref[...]
    # head: fc3 + ReLU + fc4
    z = jnp.maximum(
        jnp.dot(digits, w3_ref[...], preferred_element_type=jnp.float32) + b3_ref[...],
        0.0)
    out = jnp.dot(z, w4_ref[...], preferred_element_type=jnp.float32) + b4_ref[...]
    digits_ref[...] = digits.astype(digits_ref.dtype)
    out_ref[...] = out.astype(out_ref.dtype)


def _vmem_specs(n):
    return [pl.BlockSpec(memory_space=pltpu.MemorySpace.VMEM) for _ in range(n)]


# ---------------------------------------------------------------------------
# Pallas wrappers (single block, everything resident in VMEM)
# ---------------------------------------------------------------------------
def stage1(patches1, pk, batch):
    pool_rows = batch * 36
    return pl.pallas_call(
        functools.partial(_stage1_kernel, pool_rows=pool_rows),
        out_shape=jax.ShapeDtypeStruct((pool_rows, 32), jnp.float32),
        in_specs=_vmem_specs(5),
        out_specs=pl.BlockSpec(memory_space=pltpu.MemorySpace.VMEM),
    )(patches1, pk["w1"], pk["b1"], pk["g1"], pk["beta1"])


def stage2(patches2, pk, batch):
    return pl.pallas_call(
        functools.partial(_stage2_kernel, batch=batch),
        out_shape=(jax.ShapeDtypeStruct((batch, 20), jnp.float32),
                   jax.ShapeDtypeStruct((batch, 2), jnp.float32)),
        in_specs=_vmem_specs(13),
        out_specs=(pl.BlockSpec(memory_space=pltpu.MemorySpace.VMEM),
                   pl.BlockSpec(memory_space=pltpu.MemorySpace.VMEM)),
    )(patches2, pk["w2"], pk["b2"], pk["g2"], pk["beta2"],
      pk["w1f"], pk["b1f"], pk["w2f"], pk["b2f"],
      pk["w3"], pk["b3"], pk["w4"], pk["b4"])


# ---------------------------------------------------------------------------
# JAX glue (layout only): im2col with pool-offset-major row ordering
# ---------------------------------------------------------------------------
def _im2col_conv1(x):
    # x: (B, 2, 14, 14) -> patches (4*B*36, 50)
    # rows ordered (dy, dx, b, ph, pw); K index = c*25 + kh*5 + kw.
    B = x.shape[0]
    xp = jnp.pad(x, ((0, 0), (0, 0), (1, 1), (1, 1)))
    cols = [xp[:, :, kh:kh + 12, kw:kw + 12] for kh in range(5) for kw in range(5)]
    w = jnp.stack(cols, axis=2)            # (b, c, k, h1, w1)
    w = w.reshape(B, 2, 25, 6, 2, 6, 2)    # (b, c, k, ph, dy, pw, dx)
    w = w.transpose(4, 6, 0, 3, 5, 1, 2)   # (dy, dx, b, ph, pw, c, k)
    return w.reshape(4 * B * 36, 50)


def _im2col_conv2(pooled1, B):
    # pooled1: (B*36, 32) rows (b, ph, pw), lanes 0..15 = branch a, 16..31 = b.
    # -> patches (16*B, 800), rows (dy, dx, i2, j2, b); K = c*25 + kh*5 + kw.
    p = pooled1.reshape(B, 6, 6, 32)
    p = jnp.pad(p, ((0, 0), (1, 1), (1, 1), (0, 0)))   # (B, 8, 8, 32)
    cols = [p[:, kh:kh + 4, kw:kw + 4, :] for kh in range(5) for kw in range(5)]
    w = jnp.stack(cols, axis=3)            # (b, h2, w2, k, c)
    w = w.reshape(B, 2, 2, 2, 2, 25, 32)   # (b, i2, dy, j2, dx, k, c)
    w = w.transpose(2, 4, 1, 3, 0, 6, 5)   # (dy, dx, i2, j2, b, c, k)
    return w.reshape(16 * B, 800)


@jax.jit
def cnn_al_forward(x, pk):
    B = x.shape[0]
    patches1 = _im2col_conv1(x)
    pooled1 = stage1(patches1, pk, B)                   # (B*36, 32)
    patches2 = _im2col_conv2(pooled1, B)
    digits, x_out = stage2(patches2, pk, B)             # (B, 20), (B, 2)
    return x_out, digits[:, :10], digits[:, 10:]


# ---------------------------------------------------------------------------
# One-time weight packing (outside jit): block-diagonal, lane-packed layouts
# ---------------------------------------------------------------------------
def pack_params(params, nb_hidden):
    pa, pb = params["a"], params["b"]
    nb = nb_hidden

    w1 = jnp.zeros((50, 32), jnp.float32)
    w1 = w1.at[:25, :16].set(pa["conv1_w"].reshape(16, 25).T)
    w1 = w1.at[25:, 16:].set(pb["conv1_w"].reshape(16, 25).T)
    b1 = jnp.concatenate([pa["conv1_b"], pb["conv1_b"]]).reshape(1, 32)
    g1 = jnp.concatenate([pa["bn1_g"], pb["bn1_g"]]).reshape(1, 32)
    beta1 = jnp.concatenate([pa["bn1_b"], pb["bn1_b"]]).reshape(1, 32)

    w2 = jnp.zeros((800, 64), jnp.float32)
    w2 = w2.at[:400, :32].set(pa["conv2_w"].reshape(32, 400).T)
    w2 = w2.at[400:, 32:].set(pb["conv2_w"].reshape(32, 400).T)
    b2 = jnp.concatenate([pa["conv2_b"], pb["conv2_b"]]).reshape(1, 64)
    g2 = jnp.concatenate([pa["bn2_g"], pb["bn2_g"]]).reshape(1, 64)
    beta2 = jnp.concatenate([pa["bn2_b"], pb["bn2_b"]]).reshape(1, 64)

    # fc1: PyTorch .view(-1,128) flattens (c, h, w) -> input index c*4 + q,
    # q = h*2 + w over the 2x2 pooled grid.  Store as (q, packed_c, packed_n).
    w1fa = pa["fc1_w"].reshape(nb, 32, 4).transpose(2, 1, 0)   # (q, c, n)
    w1fb = pb["fc1_w"].reshape(nb, 32, 4).transpose(2, 1, 0)
    w1f = jnp.zeros((4, 64, 2 * nb), jnp.float32)
    w1f = w1f.at[:, :32, :nb].set(w1fa)
    w1f = w1f.at[:, 32:, nb:].set(w1fb)
    b1f = jnp.concatenate([pa["fc1_b"], pb["fc1_b"]]).reshape(1, 2 * nb)

    w2f = jnp.zeros((2 * nb, 20), jnp.float32)
    w2f = w2f.at[:nb, :10].set(pa["fc2_w"].T)
    w2f = w2f.at[nb:, 10:].set(pb["fc2_w"].T)
    b2f = jnp.concatenate([pa["fc2_b"], pb["fc2_b"]]).reshape(1, 20)

    return {
        "w1": w1, "b1": b1, "g1": g1, "beta1": beta1,
        "w2": w2, "b2": b2, "g2": g2, "beta2": beta2,
        "w1f": w1f, "b1f": b1f, "w2f": w2f, "b2f": b2f,
        "w3": params["fc3_w"].T, "b3": params["fc3_b"].reshape(1, 64),
        "w4": params["fc4_w"].T, "b4": params["fc4_b"].reshape(1, 2),
    }


# ---------------------------------------------------------------------------
# Deterministic parameter initialization (PyTorch-style uniform bounds)
# ---------------------------------------------------------------------------
def init_params(key, nb_hidden):
    keys = iter(jax.random.split(key, 64))

    def u(shape, fan_in):
        bound = 1.0 / math.sqrt(fan_in)
        return jax.random.uniform(next(keys), shape, jnp.float32, -bound, bound)

    def branch_params():
        return {
            "conv1_w": u((16, 1, 5, 5), 1 * 25),
            "conv1_b": u((16,), 1 * 25),
            "bn1_g": jnp.ones((16,), jnp.float32),
            "bn1_b": jnp.zeros((16,), jnp.float32),
            "conv2_w": u((32, 16, 5, 5), 16 * 25),
            "conv2_b": u((32,), 16 * 25),
            "bn2_g": jnp.ones((32,), jnp.float32),
            "bn2_b": jnp.zeros((32,), jnp.float32),
            "fc1_w": u((nb_hidden, 128), 128),
            "fc1_b": u((nb_hidden,), 128),
            "fc2_w": u((10, nb_hidden), nb_hidden),
            "fc2_b": u((10,), nb_hidden),
        }

    return {
        "a": branch_params(),
        "b": branch_params(),
        "fc3_w": u((64, 20), 20),
        "fc3_b": u((64,), 20),
        "fc4_w": u((2, 64), 64),
        "fc4_b": u((2,), 64),
    }


# ---------------------------------------------------------------------------
# Plain-JAX reference with PyTorch semantics (for a numerical sanity check)
# ---------------------------------------------------------------------------
def _torch_like_reference(x, params):
    hp = jax.lax.Precision.HIGHEST

    def bn(y, g, b):
        mean = y.mean(axis=(0, 2, 3), keepdims=True)
        var = ((y - mean) ** 2).mean(axis=(0, 2, 3), keepdims=True)
        return ((y - mean) * jax.lax.rsqrt(var + EPS)
                * g[None, :, None, None] + b[None, :, None, None])

    def maxpool(y):
        return jax.lax.reduce_window(y, -jnp.inf, jax.lax.max,
                                     (1, 1, 2, 2), (1, 1, 2, 2), "VALID")

    def conv(y, w, b):
        out = jax.lax.conv_general_dilated(
            y, w, (1, 1), ((1, 1), (1, 1)),
            dimension_numbers=("NCHW", "OIHW", "NCHW"), precision=hp)
        return out + b[None, :, None, None]

    def branch(xi, p):
        B = xi.shape[0]
        y = maxpool(jnp.maximum(bn(conv(xi, p["conv1_w"], p["conv1_b"]),
                                   p["bn1_g"], p["bn1_b"]), 0.0))
        y = maxpool(jnp.maximum(bn(conv(y, p["conv2_w"], p["conv2_b"]),
                                   p["bn2_g"], p["bn2_b"]), 0.0))
        f = y.reshape(B, 128)
        h = jnp.maximum(jnp.dot(f, p["fc1_w"].T, precision=hp) + p["fc1_b"], 0.0)
        return jnp.dot(h, p["fc2_w"].T, precision=hp) + p["fc2_b"]

    d1 = branch(x[:, :1], params["a"])
    d2 = branch(x[:, 1:], params["b"])
    cat = jnp.concatenate([d1, d2], axis=1)
    z = jnp.maximum(jnp.dot(cat, params["fc3_w"].T, precision=hp) + params["fc3_b"], 0.0)
    out = jnp.dot(z, params["fc4_w"].T, precision=hp) + params["fc4_b"]
    return out, d1, d2


if __name__ == "__main__":
    key = jax.random.PRNGKey(0)
    kx, kp = jax.random.split(key)
    # MNIST-pair style input: batch=2, two stacked 14x14 digit images.
    x = jax.random.normal(kx, (2, 2, 14, 14), dtype=jnp.float32)
    params = init_params(kp, NB_HIDDEN)
    packed = pack_params(params, NB_HIDDEN)   # one-time weight layout prep

    x_out, d1, d2 = cnn_al_forward(x, packed)
    jax.block_until_ready((x_out, d1, d2))

    assert x_out.shape == (2, 2) and d1.shape == (2, 10) and d2.shape == (2, 10)

    # Numerical check against a plain-JAX PyTorch-semantics reference.
    r_out, r_d1, r_d2 = _torch_like_reference(x, params)
    assert jnp.allclose(x_out, r_out, atol=2e-3, rtol=2e-3)
    assert jnp.allclose(d1, r_d1, atol=2e-3, rtol=2e-3)
    assert jnp.allclose(d2, r_d2, atol=2e-3, rtol=2e-3)

    print("KERNEL_OK")
</pallas_src>

<mosaic_0001>
module attributes {stable_mosaic.version = 11 : i64} {
  func.func @_stage1_kernel(%arg0: memref<288x50xf32, #tpu.memory_space<vmem>>, %arg1: memref<50x32xf32, #tpu.memory_space<vmem>>, %arg2: memref<1x32xf32, #tpu.memory_space<vmem>>, %arg3: memref<1x32xf32, #tpu.memory_space<vmem>>, %arg4: memref<1x32xf32, #tpu.memory_space<vmem>>, %arg5: memref<72x32xf32, #tpu.memory_space<vmem>>) attributes {dimension_semantics = [], scalar_prefetch = 0 : i64, scratch_operands = 0 : i64, tpu.core_type = #tpu.core_type<tc>} {
    %c0 = arith.constant 0 : index
    %c0_0 = arith.constant 0 : index
    %0 = vector.load %arg0[%c0, %c0_0] : memref<288x50xf32, #tpu.memory_space<vmem>>, vector<288x50xf32>
    %c0_1 = arith.constant 0 : index
    %c0_2 = arith.constant 0 : index
    %1 = vector.load %arg1[%c0_1, %c0_2] : memref<50x32xf32, #tpu.memory_space<vmem>>, vector<50x32xf32>
    %c0_3 = arith.constant 0 : index
    %c0_4 = arith.constant 0 : index
    %2 = vector.load %arg2[%c0_3, %c0_4] : memref<1x32xf32, #tpu.memory_space<vmem>>, vector<1x32xf32>
    %c0_5 = arith.constant 0 : index
    %c0_6 = arith.constant 0 : index
    %3 = vector.load %arg3[%c0_5, %c0_6] : memref<1x32xf32, #tpu.memory_space<vmem>>, vector<1x32xf32>
    %c0_7 = arith.constant 0 : index
    %c0_8 = arith.constant 0 : index
    %4 = vector.load %arg4[%c0_7, %c0_8] : memref<1x32xf32, #tpu.memory_space<vmem>>, vector<1x32xf32>
    %cst = arith.constant dense<0.000000e+00> : vector<288x32xf32>
    %5 = tpu.matmul %0, %1, %cst {dimension_numbers = #tpu.dot_dimension_numbers<[1], [0], [0], [1], [0, 0, 1, 1], [], []>} : vector<288x50xf32>, vector<50x32xf32>, vector<288x32xf32> -> vector<288x32xf32>
    %6 = vector.broadcast %2 : vector<1x32xf32> to vector<288x32xf32>
    %7 = arith.addf %5, %6 : vector<288x32xf32>
    %cst_9 = arith.constant dense<0.000000e+00> : vector<32xf32>
    %8 = vector.multi_reduction <add>, %7, %cst_9 [0] : vector<288x32xf32> to vector<32xf32>
    %9 = vector.shape_cast %8 : vector<32xf32> to vector<1x32xf32>
    %cst_10 = arith.constant 2.880000e+02 : f32
    %10 = vector.broadcast %cst_10 : f32 to vector<1x32xf32>
    %11 = arith.divf %9, %10 : vector<1x32xf32>
    %12 = arith.mulf %7, %7 : vector<288x32xf32>
    %cst_11 = arith.constant dense<0.000000e+00> : vector<32xf32>
    %13 = vector.multi_reduction <add>, %12, %cst_11 [0] : vector<288x32xf32> to vector<32xf32>
    %14 = vector.shape_cast %13 : vector<32xf32> to vector<1x32xf32>
    %cst_12 = arith.constant 2.880000e+02 : f32
    %15 = vector.broadcast %cst_12 : f32 to vector<1x32xf32>
    %16 = arith.divf %14, %15 : vector<1x32xf32>
    %17 = arith.mulf %11, %11 : vector<1x32xf32>
    %18 = arith.subf %16, %17 : vector<1x32xf32>
    %cst_13 = arith.constant 0.000000e+00 : f32
    %19 = vector.broadcast %cst_13 : f32 to vector<1x32xf32>
    %20 = arith.maximumf %18, %19 : vector<1x32xf32>
    %21 = vector.broadcast %11 : vector<1x32xf32> to vector<288x32xf32>
    %22 = arith.subf %7, %21 : vector<288x32xf32>
    %cst_14 = arith.constant 9.99999974E-6 : f32
    %23 = vector.broadcast %cst_14 : f32 to vector<1x32xf32>
    %24 = arith.addf %20, %23 : vector<1x32xf32>
    %25 = math.rsqrt %24 : vector<1x32xf32>
    %26 = vector.broadcast %25 : vector<1x32xf32> to vector<288x32xf32>
    %27 = arith.mulf %22, %26 : vector<288x32xf32>
    %28 = vector.broadcast %3 : vector<1x32xf32> to vector<288x32xf32>
    %29 = arith.mulf %27, %28 : vector<288x32xf32>
    %30 = vector.broadcast %4 : vector<1x32xf32> to vector<288x32xf32>
    %31 = arith.addf %29, %30 : vector<288x32xf32>
    %cst_15 = arith.constant 0.000000e+00 : f32
    %32 = vector.broadcast %cst_15 : f32 to vector<288x32xf32>
    %33 = arith.maximumf %31, %32 : vector<288x32xf32>
    %34 = vector.extract_strided_slice %33 {offsets = [0, 0], sizes = [72, 32], strides = [1, 1]} : vector<288x32xf32> to vector<72x32xf32>
    %35 = vector.extract_strided_slice %33 {offsets = [72, 0], sizes = [72, 32], strides = [1, 1]} : vector<288x32xf32> to vector<72x32xf32>
    %36 = arith.maximumf %34, %35 : vector<72x32xf32>
    %37 = vector.extract_strided_slice %33 {offsets = [144, 0], sizes = [72, 32], strides = [1, 1]} : vector<288x32xf32> to vector<72x32xf32>
    %38 = vector.extract_strided_slice %33 {offsets = [216, 0], sizes = [72, 32], strides = [1, 1]} : vector<288x32xf32> to vector<72x32xf32>
    %39 = arith.maximumf %37, %38 : vector<72x32xf32>
    %40 = arith.maximumf %36, %39 : vector<72x32xf32>
    %c0_16 = arith.constant 0 : index
    %c0_17 = arith.constant 0 : index
    %41 = vector.load %arg5[%c0_16, %c0_17] : memref<72x32xf32, #tpu.memory_space<vmem>>, vector<72x32xf32>
    tpu.vector_store %arg5[%c0_16, %c0_17], %40 {strides = array<i32>} : memref<72x32xf32, #tpu.memory_space<vmem>>, vector<72x32xf32>,
    return
  }
}

module attributes {stable_mosaic.version = 11 : i64} {
  func.func @_stage2_kernel(%arg0: memref<32x800xf32, #tpu.memory_space<vmem>>, %arg1: memref<800x64xf32, #tpu.memory_space<vmem>>, %arg2: memref<1x64xf32, #tpu.memory_space<vmem>>, %arg3: memref<1x64xf32, #tpu.memory_space<vmem>>, %arg4: memref<1x64xf32, #tpu.memory_space<vmem>>, %arg5: memref<4x64x64xf32, #tpu.memory_space<vmem>>, %arg6: memref<1x64xf32, #tpu.memory_space<vmem>>, %arg7: memref<64x20xf32, #tpu.memory_space<vmem>>, %arg8: memref<1x20xf32, #tpu.memory_space<vmem>>, %arg9: memref<20x64xf32, #tpu.memory_space<vmem>>, %arg10: memref<1x64xf32, #tpu.memory_space<vmem>>, %arg11: memref<64x2xf32, #tpu.memory_space<vmem>>, %arg12: memref<1x2xf32, #tpu.memory_space<vmem>>, %arg13: memref<2x20xf32, #tpu.memory_space<vmem>>, %arg14: memref<2x2xf32, #tpu.memory_space<vmem>>) attributes {dimension_semantics = [], scalar_prefetch = 0 : i64, scratch_operands = 0 : i64, tpu.core_type = #tpu.core_type<tc>} {
    %c0 = arith.constant 0 : index
    %c0_0 = arith.constant 0 : index
    %0 = vector.load %arg0[%c0, %c0_0] : memref<32x800xf32, #tpu.memory_space<vmem>>, vector<32x800xf32>
    %c0_1 = arith.constant 0 : index
    %c0_2 = arith.constant 0 : index
    %1 = vector.load %arg1[%c0_1, %c0_2] : memref<800x64xf32, #tpu.memory_space<vmem>>, vector<800x64xf32>
    %c0_3 = arith.constant 0 : index
    %c0_4 = arith.constant 0 : index
    %2 = vector.load %arg2[%c0_3, %c0_4] : memref<1x64xf32, #tpu.memory_space<vmem>>, vector<1x64xf32>
    %c0_5 = arith.constant 0 : index
    %c0_6 = arith.constant 0 : index
    %3 = vector.load %arg3[%c0_5, %c0_6] : memref<1x64xf32, #tpu.memory_space<vmem>>, vector<1x64xf32>
    %c0_7 = arith.constant 0 : index
    %c0_8 = arith.constant 0 : index
    %4 = vector.load %arg4[%c0_7, %c0_8] : memref<1x64xf32, #tpu.memory_space<vmem>>, vector<1x64xf32>
    %cst = arith.constant dense<0.000000e+00> : vector<32x64xf32>
    %5 = tpu.matmul %0, %1, %cst {dimension_numbers = #tpu.dot_dimension_numbers<[1], [0], [0], [1], [0, 0, 1, 1], [], []>} : vector<32x800xf32>, vector<800x64xf32>, vector<32x64xf32> -> vector<32x64xf32>
    %6 = vector.broadcast %2 : vector<1x64xf32> to vector<32x64xf32>
    %7 = arith.addf %5, %6 : vector<32x64xf32>
    %cst_9 = arith.constant dense<0.000000e+00> : vector<64xf32>
    %8 = vector.multi_reduction <add>, %7, %cst_9 [0] : vector<32x64xf32> to vector<64xf32>
    %9 = vector.shape_cast %8 : vector<64xf32> to vector<1x64xf32>
    %cst_10 = arith.constant 3.200000e+01 : f32
    %10 = vector.broadcast %cst_10 : f32 to vector<1x64xf32>
    %11 = arith.divf %9, %10 : vector<1x64xf32>
    %12 = arith.mulf %7, %7 : vector<32x64xf32>
    %cst_11 = arith.constant dense<0.000000e+00> : vector<64xf32>
    %13 = vector.multi_reduction <add>, %12, %cst_11 [0] : vector<32x64xf32> to vector<64xf32>
    %14 = vector.shape_cast %13 : vector<64xf32> to vector<1x64xf32>
    %cst_12 = arith.constant 3.200000e+01 : f32
    %15 = vector.broadcast %cst_12 : f32 to vector<1x64xf32>
    %16 = arith.divf %14, %15 : vector<1x64xf32>
    %17 = arith.mulf %11, %11 : vector<1x64xf32>
    %18 = arith.subf %16, %17 : vector<1x64xf32>
    %cst_13 = arith.constant 0.000000e+00 : f32
    %19 = vector.broadcast %cst_13 : f32 to vector<1x64xf32>
    %20 = arith.maximumf %18, %19 : vector<1x64xf32>
    %21 = vector.broadcast %11 : vector<1x64xf32> to vector<32x64xf32>
    %22 = arith.subf %7, %21 : vector<32x64xf32>
    %cst_14 = arith.constant 9.99999974E-6 : f32
    %23 = vector.broadcast %cst_14 : f32 to vector<1x64xf32>
    %24 = arith.addf %20, %23 : vector<1x64xf32>
    %25 = math.rsqrt %24 : vector<1x64xf32>
    %26 = vector.broadcast %25 : vector<1x64xf32> to vector<32x64xf32>
    %27 = arith.mulf %22, %26 : vector<32x64xf32>
    %28 = vector.broadcast %3 : vector<1x64xf32> to vector<32x64xf32>
    %29 = arith.mulf %27, %28 : vector<32x64xf32>
    %30 = vector.broadcast %4 : vector<1x64xf32> to vector<32x64xf32>
    %31 = arith.addf %29, %30 : vector<32x64xf32>
    %cst_15 = arith.constant 0.000000e+00 : f32
    %32 = vector.broadcast %cst_15 : f32 to vector<32x64xf32>
    %33 = arith.maximumf %31, %32 : vector<32x64xf32>
    %34 = vector.extract_strided_slice %33 {offsets = [0, 0], sizes = [8, 64], strides = [1, 1]} : vector<32x64xf32> to vector<8x64xf32>
    %35 = vector.extract_strided_slice %33 {offsets = [8, 0], sizes = [8, 64], strides = [1, 1]} : vector<32x64xf32> to vector<8x64xf32>
    %36 = arith.maximumf %34, %35 : vector<8x64xf32>
    %37 = vector.extract_strided_slice %33 {offsets = [16, 0], sizes = [8, 64], strides = [1, 1]} : vector<32x64xf32> to vector<8x64xf32>
    %38 = vector.extract_strided_slice %33 {offsets = [24, 0], sizes = [8, 64], strides = [1, 1]} : vector<32x64xf32> to vector<8x64xf32>
    %39 = arith.maximumf %37, %38 : vector<8x64xf32>
    %40 = arith.maximumf %36, %39 : vector<8x64xf32>
    %c0_16 = arith.constant 0 : index
    %c0_17 = arith.constant 0 : index
    %41 = vector.load %arg6[%c0_16, %c0_17] : memref<1x64xf32, #tpu.memory_space<vmem>>, vector<1x64xf32>
    %42 = vector.extract_strided_slice %40 {offsets = [0, 0], sizes = [2, 64], strides = [1, 1]} : vector<8x64xf32> to vector<2x64xf32>
    %c0_18 = arith.constant 0 : index
    %c0_19 = arith.constant 0 : index
    %c0_20 = arith.constant 0 : index
    %43 = vector.load %arg5[%c0_18, %c0_19, %c0_20] : memref<4x64x64xf32, #tpu.memory_space<vmem>>, vector<1x64x64xf32>
    %44 = vector.shape_cast %43 : vector<1x64x64xf32> to vector<64x64xf32>
    %cst_21 = arith.constant dense<0.000000e+00> : vector<2x64xf32>
    %45 = tpu.matmul %42, %44, %cst_21 {dimension_numbers = #tpu.dot_dimension_numbers<[1], [0], [0], [1], [0, 0, 1, 1], [], []>} : vector<2x64xf32>, vector<64x64xf32>, vector<2x64xf32> -> vector<2x64xf32>
    %46 = vector.broadcast %41 : vector<1x64xf32> to vector<2x64xf32>
    %47 = arith.addf %46, %45 : vector<2x64xf32>
    %48 = vector.extract_strided_slice %40 {offsets = [2, 0], sizes = [2, 64], strides = [1, 1]} : vector<8x64xf32> to vector<2x64xf32>
    %c1 = arith.constant 1 : index
    %c0_22 = arith.constant 0 : index
    %c0_23 = arith.constant 0 : index
    %49 = vector.load %arg5[%c1, %c0_22, %c0_23] : memref<4x64x64xf32, #tpu.memory_space<vmem>>, vector<1x64x64xf32>
    %50 = vector.shape_cast %49 : vector<1x64x64xf32> to vector<64x64xf32>
    %cst_24 = arith.constant dense<0.000000e+00> : vector<2x64xf32>
    %51 = tpu.matmul %48, %50, %cst_24 {dimension_numbers = #tpu.dot_dimension_numbers<[1], [0], [0], [1], [0, 0, 1, 1], [], []>} : vector<2x64xf32>, vector<64x64xf32>, vector<2x64xf32> -> vector<2x64xf32>
    %52 = arith.addf %47, %51 : vector<2x64xf32>
    %53 = vector.extract_strided_slice %40 {offsets = [4, 0], sizes = [2, 64], strides = [1, 1]} : vector<8x64xf32> to vector<2x64xf32>
    %c2 = arith.constant 2 : index
    %c0_25 = arith.constant 0 : index
    %c0_26 = arith.constant 0 : index
    %54 = vector.load %arg5[%c2, %c0_25, %c0_26] : memref<4x64x64xf32, #tpu.memory_space<vmem>>, vector<1x64x64xf32>
    %55 = vector.shape_cast %54 : vector<1x64x64xf32> to vector<64x64xf32>
    %cst_27 = arith.constant dense<0.000000e+00> : vector<2x64xf32>
    %56 = tpu.matmul %53, %55, %cst_27 {dimension_numbers = #tpu.dot_dimension_numbers<[1], [0], [0], [1], [0, 0, 1, 1], [], []>} : vector<2x64xf32>, vector<64x64xf32>, vector<2x64xf32> -> vector<2x64xf32>
    %57 = arith.addf %52, %56 : vector<2x64xf32>
    %58 = vector.extract_strided_slice %40 {offsets = [6, 0], sizes = [2, 64], strides = [1, 1]} : vector<8x64xf32> to vector<2x64xf32>
    %c3 = arith.constant 3 : index
    %c0_28 = arith.constant 0 : index
    %c0_29 = arith.constant 0 : index
    %59 = vector.load %arg5[%c3, %c0_28, %c0_29] : memref<4x64x64xf32, #tpu.memory_space<vmem>>, vector<1x64x64xf32>
    %60 = vector.shape_cast %59 : vector<1x64x64xf32> to vector<64x64xf32>
    %cst_30 = arith.constant dense<0.000000e+00> : vector<2x64xf32>
    %61 = tpu.matmul %58, %60, %cst_30 {dimension_numbers = #tpu.dot_dimension_numbers<[1], [0], [0], [1], [0, 0, 1, 1], [], []>} : vector<2x64xf32>, vector<64x64xf32>, vector<2x64xf32> -> vector<2x64xf32>
    %62 = arith.addf %57, %61 : vector<2x64xf32>
    %cst_31 = arith.constant 0.000000e+00 : f32
    %63 = vector.broadcast %cst_31 : f32 to vector<2x64xf32>
    %64 = arith.maximumf %62, %63 : vector<2x64xf32>
    %c0_32 = arith.constant 0 : index
    %c0_33 = arith.constant 0 : index
    %65 = vector.load %arg7[%c0_32, %c0_33] : memref<64x20xf32, #tpu.memory_space<vmem>>, vector<64x20xf32>
    %cst_34 = arith.constant dense<0.000000e+00> : vector<2x20xf32>
    %66 = tpu.matmul %64, %65, %cst_34 {dimension_numbers = #tpu.dot_dimension_numbers<[1], [0], [0], [1], [0, 0, 1, 1], [], []>} : vector<2x64xf32>, vector<64x20xf32>, vector<2x20xf32> -> vector<2x20xf32>
    %c0_35 = arith.constant 0 : index
    %c0_36 = arith.constant 0 : index
    %67 = vector.load %arg8[%c0_35, %c0_36] : memref<1x20xf32, #tpu.memory_space<vmem>>, vector<1x20xf32>
    %68 = vector.broadcast %67 : vector<1x20xf32> to vector<2x20xf32>
    %69 = arith.addf %66, %68 : vector<2x20xf32>
    %c0_37 = arith.constant 0 : index
    %c0_38 = arith.constant 0 : index
    %70 = vector.load %arg9[%c0_37, %c0_38] : memref<20x64xf32, #tpu.memory_space<vmem>>, vector<20x64xf32>
    %cst_39 = arith.constant dense<0.000000e+00> : vector<2x64xf32>
    %71 = tpu.matmul %69, %70, %cst_39 {dimension_numbers = #tpu.dot_dimension_numbers<[1], [0], [0], [1], [0, 0, 1, 1], [], []>} : vector<2x20xf32>, vector<20x64xf32>, vector<2x64xf32> -> vector<2x64xf32>
    %c0_40 = arith.constant 0 : index
    %c0_41 = arith.constant 0 : index
    %72 = vector.load %arg10[%c0_40, %c0_41] : memref<1x64xf32, #tpu.memory_space<vmem>>, vector<1x64xf32>
    %73 = vector.broadcast %72 : vector<1x64xf32> to vector<2x64xf32>
    %74 = arith.addf %71, %73 : vector<2x64xf32>
    %cst_42 = arith.constant 0.000000e+00 : f32
    %75 = vector.broadcast %cst_42 : f32 to vector<2x64xf32>
    %76 = arith.maximumf %74, %75 : vector<2x64xf32>
    %c0_43 = arith.constant 0 : index
    %c0_44 = arith.constant 0 : index
    %77 = vector.load %arg11[%c0_43, %c0_44] : memref<64x2xf32, #tpu.memory_space<vmem>>, vector<64x2xf32>
    %cst_45 = arith.constant dense<0.000000e+00> : vector<2x2xf32>
    %78 = tpu.matmul %76, %77, %cst_45 {dimension_numbers = #tpu.dot_dimension_numbers<[1], [0], [0], [1], [0, 0, 1, 1], [], []>} : vector<2x64xf32>, vector<64x2xf32>, vector<2x2xf32> -> vector<2x2xf32>
    %c0_46 = arith.constant 0 : index
    %c0_47 = arith.constant 0 : index
    %79 = vector.load %arg12[%c0_46, %c0_47] : memref<1x2xf32, #tpu.memory_space<vmem>>, vector<1x2xf32>
    %80 = vector.broadcast %79 : vector<1x2xf32> to vector<2x2xf32>
    %81 = arith.addf %78, %80 : vector<2x2xf32>
    %c0_48 = arith.constant 0 : index
    %c0_49 = arith.constant 0 : index
    %82 = vector.load %arg13[%c0_48, %c0_49] : memref<2x20xf32, #tpu.memory_space<vmem>>, vector<2x20xf32>
    tpu.vector_store %arg13[%c0_48, %c0_49], %69 {strides = array<i32>} : memref<2x20xf32, #tpu.memory_space<vmem>>, vector<2x20xf32>,
    %c0_50 = arith.constant 0 : index
    %c0_51 = arith.constant 0 : index
    %83 = vector.load %arg14[%c0_50, %c0_51] : memref<2x2xf32, #tpu.memory_space<vmem>>, vector<2x2xf32>
    tpu.vector_store %arg14[%c0_50, %c0_51], %81 {strides = array<i32>} : memref<2x2xf32, #tpu.memory_space<vmem>>, vector<2x2xf32>,
    return
  }
}

</mosaic_0001>

<bundles_post_ra>
// kernel: cnn_al_forward.2
= control target key start
LH: loop header
LB: loop body
LE: loop exit
PB: predicated region body
PF: predicated region fallthrough
CT: control target
= control target key end

     0   :  { %vm72_vm0 = vcmask 408576   ;;  %vm181_vm1 = vcmask 1041408   ;;  %vm430_vm2 = vcmask 261120   ;;  %s1766_s1 = inlined_call_operand.vmem [shape: f32[50,32], index: 1, kind: input, shape index: {}]   ;;  %s1767_s0 = inlined_call_operand.vmem [shape: f32[288,50], index: 0, kind: input, shape index: {}]   ;;  %s1768_s2 = inlined_call_operand.vmem [shape: f32[1,32], index: 2, kind: input, shape index: {}]   ;;  %s1769_s3 = inlined_call_operand.vmem [shape: f32[1,32], index: 3, kind: input, shape index: {}]   ;;  %s1770_s4 = inlined_call_operand.vmem [shape: f32[1,32], index: 4, kind: input, shape index: {}]   ;;  %s1771_s5 = inlined_call_operand.vmem [shape: f32[72,32], index: 5, kind: output, shape index: {}]  }
   0x1   :  { %v56_v0 = vld [vmem:[%s1766_s1] sm:$0xff]  ;;  %v57_v1 = vld [vmem:[%s1766_s1 + $0x8] sm:$0xff]  ;;  %v58_v2 = vld [vmem:[%s1766_s1 + $0x10] sm:$0xff] }
   0x2   :  { %v1012_v3 = vpack.c.bf16 %v57_v1, %v56_v0  ;;  %v59_v4 = vld [vmem:[%s1766_s1 + $0x18] sm:$0xff]  ;;  %v60_v6 = vld [vmem:[%s1766_s1 + $0x20] sm:$0xff]  ;;  %v61_v7 = vld [vmem:[%s1766_s1 + $0x28] sm:$0xff] }
   0x3   :  { %v1016_v5 = vpack.c.bf16 %v59_v4, %v58_v2  ;;  %v20_v8 = vld [vmem:[%s1767_s0] sm:$0xff]  ;;  %v1020_v9 = vpack.c.bf16 %v61_v7, %v60_v6  ;;  %v38_v10 = vld [vmem:[%s1767_s0 + $0x90] sm:$0xff]  ;;  %v21_v12 = vld [vmem:[%s1767_s0 + $0x8] sm:$0xff] }
   0x4   :  { %1013 = vmatprep.subr.bf16.mxu0 %v1012_v3  ;;  %958 = vmatprep.mubr.msk.f32.mxu0 %vm72_vm0, %v20_v8  ;;  %v62_v11 = vld [vmem:[%s1766_s1 + $0x30] sm:$0x3]  ;;  %v39_v14 = vld [vmem:[%s1767_s0 + $0x98] sm:$0xff]  ;;  %v40_v15 = vld [vmem:[%s1767_s0 + $0xa0] sm:$0xff] }
   0x5   :  { %1015 = vmatpush3.bf16.msra.mxu0 %v1012_v3  ;;  %1024 = vmatprep.subr.bf16.mxu1 %v1012_v3  ;;  %v22_v13 = vld [vmem:[%s1767_s0 + $0x10] sm:$0xff]  ;;  %v23_v16 = vld [vmem:[%s1767_s0 + $0x18] sm:$0xff]  ;;  %v24_v17 = vld [vmem:[%s1767_s0 + $0x20] sm:$0xff] }
   0x6   :  { %1017 = vmatprep.subr.bf16.mxu0 %v1016_v5  ;;  %1028 = vmatpush3.bf16.msra.mxu1 %v1012_v3  ;;  %v41_v18 = vld [vmem:[%s1767_s0 + $0xa8] sm:$0xff]  ;;  %v42_v19 = vld [vmem:[%s1767_s0 + $0xb0] sm:$0xff]  ;;  %v43_v22 = vld [vmem:[%s1767_s0 + $0xb8] sm:$0xff] }
   0x7   :  { %1025 = vmatprep.subr.bf16.mxu1 %v1016_v5  ;;  %985 = vmatprep.mubr.msk.f32.mxu1 %vm72_vm0, %v38_v10  ;;  %v25_v20 = vld [vmem:[%s1767_s0 + $0x28] sm:$0xff]  ;;  %v26_v21 = vld [vmem:[%s1767_s0 + $0x30] sm:$0xff]  ;;  %v44_v23 = vld [vmem:[%s1767_s0 + $0xc0] sm:$0xff] }
   0x8   :  { %v27_v24 = vld [vmem:[%s1767_s0 + $0x38] sm:$0xff]  ;;  %v28_v25 = vld [vmem:[%s1767_s0 + $0x40] sm:$0xff]  ;;  %v45_v26 = vld [vmem:[%s1767_s0 + $0xc8] sm:$0xff] }
   0x9   :  { %1019 = vmatpush3.bf16.msra.mxu0 %v1016_v5  ;;  %v46_v27 = vld [vmem:[%s1767_s0 + $0xd0] sm:$0xff]  ;;  %v29_v28 = vld [vmem:[%s1767_s0 + $0x48] sm:$0xff]  ;;  %v47_v30 = vld [vmem:[%s1767_s0 + $0xd8] sm:$0xff] }
   0xa   :  { %1021 = vmatprep.subr.bf16.mxu0 %v1020_v9  ;;  %1029 = vmatpush3.bf16.msra.mxu1 %v1016_v5  ;;  %v30_v29 = vld [vmem:[%s1767_s0 + $0x50] sm:$0xff]  ;;  %v48_v31 = vld [vmem:[%s1767_s0 + $0xe0] sm:$0xff]  ;;  %v31_v32 = vld [vmem:[%s1767_s0 + $0x58] sm:$0xff] }
   0xb   :  { %1026 = vmatprep.subr.bf16.mxu1 %v1020_v9  ;;  %v32_v33 = vld [vmem:[%s1767_s0 + $0x60] sm:$0xff]  ;;  %v49_v34 = vld [vmem:[%s1767_s0 + $0xe8] sm:$0xff]  ;;  %v50_v35 = vld [vmem:[%s1767_s0 + $0xf0] sm:$0xff] }
   0xc   :  { %v33_v36 = vld [vmem:[%s1767_s0 + $0x68] sm:$0xff]  ;;  %v34_v37 = vld [vmem:[%s1767_s0 + $0x70] sm:$0xff]  ;;  %v51_v38 = vld [vmem:[%s1767_s0 + $0xf8] sm:$0xff] }
   0xd   :  { %1023 = vmatpush3.bf16.msra.mxu0 %v1020_v9  ;;  %v52_v39 = vld [vmem:[%s1767_s0 + $0x100] sm:$0xff]  ;;  %v35_v40 = vld [vmem:[%s1767_s0 + $0x78] sm:$0xff]  ;;  %v53_v42 = vld [vmem:[%s1767_s0 + $0x108] sm:$0xff] }
   0xe   :  { %956 = vmatprep.subr.msk.mxu0 %vm181_vm1, %v62_v11  ;;  %1030 = vmatpush3.bf16.msra.mxu1 %v1020_v9  ;;  %v36_v41 = vld [vmem:[%s1767_s0 + $0x80] sm:$0xff]  ;;  %v54_v43 = vld [vmem:[%s1767_s0 + $0x110] sm:$0xff]  ;;  %v37_v44 = vld [vmem:[%s1767_s0 + $0x88] sm:$0xff] }
   0xf   :  { %1027 = vmatprep.subr.msk.mxu1 %vm181_vm1, %v62_v11  ;;  %v55_v45 = vld [vmem:[%s1767_s0 + $0x118] sm:$0xff]  ;;  %v1232_v46 = vld [vmem:[%s1768_s2] ss:$0 sm:$0xff] }
  0x11   :  { %957 = vmatpush3.msk.msra.mxu0 %vm181_vm1, %v62_v11 }
  0x12   :  { %959 = vmatmul.mubr.msk.f32.vlgmr.msra.gmra.mrb[0].mxu0 %vm72_vm0, %v21_v12  ;;  %1031 = vmatpush3.msk.msra.mxu1 %vm181_vm1, %v62_v11 }
  0x13   :  { %961 = vmatprep.mubr.msk.f32.mxu0 %vm72_vm0, %v22_v13  ;;  %986 = vmatmul.mubr.msk.f32.vlgmr.msra.gmra.mrb[0].mxu1 %vm72_vm0, %v39_v14 }
  0x14   :  { %988 = vmatprep.mubr.msk.f32.mxu1 %vm72_vm0, %v40_v15 }
  0x16   :  { %962 = vmatmul.mubr.msk.f32.gmra.mrb[2].mxu0 %vm72_vm0, %v23_v16 }
  0x17   :  { %964 = vmatprep.mubr.msk.f32.mxu0 %vm72_vm0, %v24_v17  ;;  %989 = vmatmul.mubr.msk.f32.gmra.mrb[2].mxu1 %vm72_vm0, %v41_v18 }
  0x18   :  { %991 = vmatprep.mubr.msk.f32.mxu1 %vm72_vm0, %v42_v19 }
  0x1a   :  { %965 = vmatmul.mubr.msk.f32.gmra.mrb[4].mxu0 %vm72_vm0, %v25_v20 }
  0x1b   :  { %967 = vmatprep.mubr.msk.f32.mxu0 %vm72_vm0, %v26_v21  ;;  %992 = vmatmul.mubr.msk.f32.gmra.mrb[4].mxu1 %vm72_vm0, %v43_v22 }
  0x1c   :  { %994 = vmatprep.mubr.msk.f32.mxu1 %vm72_vm0, %v44_v23 }
  0x1e   :  { %968 = vmatmul.mubr.msk.f32.gmra.mrb[6].mxu0 %vm72_vm0, %v27_v24 }
  0x1f   :  { %970 = vmatprep.mubr.msk.f32.mxu0 %vm72_vm0, %v28_v25  ;;  %995 = vmatmul.mubr.msk.f32.gmra.mrb[6].mxu1 %vm72_vm0, %v45_v26 }
  0x20   :  { %997 = vmatprep.mubr.msk.f32.mxu1 %vm72_vm0, %v46_v27 }
  0x22   :  { %971 = vmatmul.mubr.msk.f32.gmra.mrb[8].mxu0 %vm72_vm0, %v29_v28 }
  0x23   :  { %973 = vmatprep.mubr.msk.f32.mxu0 %vm72_vm0, %v30_v29  ;;  %998 = vmatmul.mubr.msk.f32.gmra.mrb[8].mxu1 %vm72_vm0, %v47_v30 }
  0x24   :  { %1000 = vmatprep.mubr.msk.f32.mxu1 %vm72_vm0, %v48_v31 }
  0x26   :  { %974 = vmatmul.mubr.msk.f32.gmra.mrb[10].mxu0 %vm72_vm0, %v31_v32 }
  0x27   :  { %976 = vmatprep.mubr.msk.f32.mxu0 %vm72_vm0, %v32_v33  ;;  %1001 = vmatmul.mubr.msk.f32.gmra.mrb[10].mxu1 %vm72_vm0, %v49_v34 }
  0x28   :  { %1003 = vmatprep.mubr.msk.f32.mxu1 %vm72_vm0, %v50_v35 }
  0x2a   :  { %977 = vmatmul.mubr.msk.f32.gmra.mrb[12].mxu0 %vm72_vm0, %v33_v36 }
  0x2b   :  { %979 = vmatprep.mubr.msk.f32.mxu0 %vm72_vm0, %v34_v37  ;;  %1004 = vmatmul.mubr.msk.f32.gmra.mrb[12].mxu1 %vm72_vm0, %v51_v38 }
  0x2c   :  { %1006 = vmatprep.mubr.msk.f32.mxu1 %vm72_vm0, %v52_v39 }
  0x2e   :  { %980 = vmatmul.mubr.msk.f32.gmra.mrb[14].mxu0 %vm72_vm0, %v35_v40 }
  0x2f   :  { %982 = vmatprep.mubr.msk.f32.mxu0 %vm72_vm0, %v36_v41  ;;  %1007 = vmatmul.mubr.msk.f32.gmra.mrb[14].mxu1 %vm72_vm0, %v53_v42 }
  0x30   :  { %1009 = vmatprep.mubr.msk.f32.mxu1 %vm72_vm0, %v54_v43 }
  0x32   :  { %983 = vmatmul.mubr.msk.f32.gmra.mrb[16].mxu0 %vm72_vm0, %v37_v44 }
  0x33   :  { %1010 = vmatmul.mubr.msk.f32.gmra.mrb[16].mxu1 %vm72_vm0, %v55_v45 }
  0xe5   :  { %v960_v47 = vpop.f32.mrb[0].mxu0 }
  0xe6   :  { %v1235_v48 = vadd.f32 %v960_v47, %v1232_v46  ;;  %v251_v49 = vpop.f32.mrb[1].mxu0  ;;  %v1237_v50 = vpop.f32.mrb[0].mxu1 }
  0xe7   :  { %v1240_v51 = vadd.f32 %v1232_v46, %v251_v49  ;;  %v1242_v52 = vpop.f32.mrb[1].mxu1 }
  0xe8   :  { %v511_v53 = vmul.f32 %v1235_v48, %v1235_v48  ;;  %v432_v54 = vsel %vm430_vm2, %v1235_v48, 0.0 }
  0xe9   :  { %v431_v55 = vsel %vm430_vm2, %v1240_v51, 0.0  ;;  %v510_v56 = vmul.f32 %v1240_v51, %v1240_v51  ;;  %v963_v57 = vpop.f32.mrb[2].mxu0 }
  0xea   :  { %v1253_v58 = vadd.f32 %v963_v57, %v1232_v46  ;;  %v261_v59 = vpop.f32.mrb[3].mxu0  ;;  %v1255_v60 = vpop.f32.mrb[2].mxu1  ;;  %v547_v61 = vsel %vm430_vm2, %v511_v53, 0.0  ;;  %v433_v1 = vadd.f32 %v432_v54, %v431_v55 }
  0xeb   :  { %v546_v62 = vsel %vm430_vm2, %v510_v56, 0.0  ;;  %v1260_v63 = vadd.f32 %v1232_v46, %v261_v59  ;;  %v1262_v0 = vpop.f32.mrb[3].mxu1 }
  0xec   :  { %v513_v2 = vmul.f32 %v1253_v58, %v1253_v58  ;;  %v548_v6 = vadd.f32 %v547_v61, %v546_v62  ;;  %v436_v11 = vsel %vm430_vm2, %v1253_v58, 0.0 }
  0xed   :  { %v434_v3 = vsel %vm430_vm2, %v1260_v63, 0.0  ;;  %v512_v4 = vmul.f32 %v1260_v63, %v1260_v63  ;;  %v966_v5 = vpop.f32.mrb[4].mxu0 }
  0xee   :  { %v435_v7 = vadd.f32 %v434_v3, %v433_v1  ;;  %v1271_v8 = vadd.f32 %v966_v5, %v1232_v46  ;;  %v271_v9 = vpop.f32.mrb[5].mxu0  ;;  %v1273_v10 = vpop.f32.mrb[4].mxu1  ;;  %v551_v17 = vsel %vm430_vm2, %v513_v2, 0.0 }
  0xef   :  { %v549_v12 = vsel %vm430_vm2, %v512_v4, 0.0  ;;  %v1279_v13 = vadd.f32 %v1232_v46, %v271_v9  ;;  %v1281_v14 = vpop.f32.mrb[5].mxu1 }
  0xf0   :  { %v550_v15 = vadd.f32 %v549_v12, %v548_v6  ;;  %v437_v16 = vadd.f32 %v436_v11, %v435_v7  ;;  %v515_v18 = vmul.f32 %v1271_v8, %v1271_v8  ;;  %v440_v27 = vsel %vm430_vm2, %v1271_v8, 0.0 }
  0xf1   :  { %v438_v19 = vsel %vm430_vm2, %v1279_v13, 0.0  ;;  %v514_v20 = vmul.f32 %v1279_v13, %v1279_v13  ;;  %v969_v21 = vpop.f32.mrb[6].mxu0 }
  0xf2   :  { %v439_v22 = vadd.f32 %v438_v19, %v437_v16  ;;  %v552_v23 = vadd.f32 %v551_v17, %v550_v15  ;;  %v1291_v24 = vadd.f32 %v969_v21, %v1232_v46  ;;  %v281_v25 = vpop.f32.mrb[7].mxu0  ;;  %v1293_v26 = vpop.f32.mrb[6].mxu1  ;;  %v555_v33 = vsel %vm430_vm2, %v515_v18, 0.0 }
  0xf3   :  { %v553_v28 = vsel %vm430_vm2, %v514_v20, 0.0  ;;  %v1299_v29 = vadd.f32 %v1232_v46, %v281_v25  ;;  %v1301_v30 = vpop.f32.mrb[7].mxu1 }
  0xf4   :  { %v554_v31 = vadd.f32 %v553_v28, %v552_v23  ;;  %v441_v32 = vadd.f32 %v440_v27, %v439_v22  ;;  %v517_v34 = vmul.f32 %v1291_v24, %v1291_v24  ;;  %v444_v43 = vsel %vm430_vm2, %v1291_v24, 0.0 }
  0xf5   :  { %v442_v35 = vsel %vm430_vm2, %v1299_v29, 0.0  ;;  %v516_v36 = vmul.f32 %v1299_v29, %v1299_v29  ;;  %v972_v37 = vpop.f32.mrb[8].mxu0 }
  0xf6   :  { %v443_v38 = vadd.f32 %v442_v35, %v441_v32  ;;  %v556_v39 = vadd.f32 %v555_v33, %v554_v31  ;;  %v1311_v40 = vadd.f32 %v972_v37, %v1232_v46  ;;  %v291_v41 = vpop.f32.mrb[9].mxu0  ;;  %v1313_v42 = vpop.f32.mrb[8].mxu1  ;;  %v559_v54 = vsel %vm430_vm2, %v517_v34, 0.0 }
  0xf7   :  { %v557_v44 = vsel %vm430_vm2, %v516_v36, 0.0  ;;  %v1319_v45 = vadd.f32 %v1232_v46, %v291_v41  ;;  %v1321_v47 = vpop.f32.mrb[9].mxu1 }
  0xf8   :  { %v558_v49 = vadd.f32 %v557_v44, %v556_v39  ;;  %v445_v53 = vadd.f32 %v444_v43, %v443_v38  ;;  %v519_v55 = vmul.f32 %v1311_v40, %v1311_v40  ;;  %v448_v4 = vsel %vm430_vm2, %v1311_v40, 0.0 }
  0xf9   :  { %v446_v56 = vsel %vm430_vm2, %v1319_v45, 0.0  ;;  %v518_v57 = vmul.f32 %v1319_v45, %v1319_v45  ;;  %v975_v59 = vpop.f32.mrb[10].mxu0 }
  0xfa   :  { %v447_v61 = vadd.f32 %v446_v56, %v445_v53  ;;  %v560_v62 = vadd.f32 %v559_v54, %v558_v49  ;;  %v1331_v1 = vadd.f32 %v975_v59, %v1232_v46  ;;  %v301_v2 = vpop.f32.mrb[11].mxu0  ;;  %v1333_v3 = vpop.f32.mrb[10].mxu1  ;;  %v563_v12 = vsel %vm430_vm2, %v519_v55, 0.0 }
  0xfb   :  { %v561_v5 = vsel %vm430_vm2, %v518_v57, 0.0  ;;  %v1339_v6 = vadd.f32 %v1232_v46, %v301_v2  ;;  %v1341_v7 = vpop.f32.mrb[11].mxu1 }
  0xfc   :  { %v562_v9 = vadd.f32 %v561_v5, %v560_v62  ;;  %v449_v11 = vadd.f32 %v448_v4, %v447_v61  ;;  %v521_v15 = vmul.f32 %v1331_v1, %v1331_v1  ;;  %v452_v25 = vsel %vm430_vm2, %v1331_v1, 0.0 }
  0xfd   :  { %v450_v16 = vsel %vm430_vm2, %v1339_v6, 0.0  ;;  %v520_v17 = vmul.f32 %v1339_v6, %v1339_v6  ;;  %v978_v18 = vpop.f32.mrb[12].mxu0  ;;  %v1383_v61 = vadd.f32 %v1232_v46, %v1242_v52 }
  0xfe   :  { %v451_v19 = vadd.f32 %v450_v16, %v449_v11  ;;  %v564_v20 = vadd.f32 %v563_v12, %v562_v9  ;;  %v1351_v21 = vadd.f32 %v978_v18, %v1232_v46  ;;  %v311_v22 = vpop.f32.mrb[13].mxu0  ;;  %v1353_v23 = vpop.f32.mrb[12].mxu1  ;;  %v567_v34 = vsel %vm430_vm2, %v521_v15, 0.0 }
  0xff   :  { %v565_v27 = vsel %vm430_vm2, %v520_v17, 0.0  ;;  %v1359_v28 = vadd.f32 %v1232_v46, %v311_v22  ;;  %v1361_v31 = vpop.f32.mrb[13].mxu1 }
 0x100   :  { %v566_v32 = vadd.f32 %v565_v27, %v564_v20  ;;  %v453_v33 = vadd.f32 %v452_v25, %v451_v19  ;;  %v523_v35 = vmul.f32 %v1351_v21, %v1351_v21  ;;  %v456_v53 = vsel %vm430_vm2, %v1351_v21, 0.0 }
 0x101   :  { %v454_v36 = vsel %vm430_vm2, %v1359_v28, 0.0  ;;  %v522_v37 = vmul.f32 %v1359_v28, %v1359_v28  ;;  %v981_v38 = vpop.f32.mrb[14].mxu0  ;;  %v1403_v20 = vadd.f32 %v1237_v50, %v1232_v46 }
 0x102   :  { %v455_v39 = vadd.f32 %v454_v36, %v453_v33  ;;  %v568_v41 = vadd.f32 %v567_v34, %v566_v32  ;;  %v1371_v43 = vadd.f32 %v981_v38, %v1232_v46  ;;  %v321_v44 = vpop.f32.mrb[15].mxu0  ;;  %v1008_v49 = vpop.f32.mrb[14].mxu1  ;;  %v571_v62 = vsel %vm430_vm2, %v523_v35, 0.0 }
 0x103   :  { %v569_v54 = vsel %vm430_vm2, %v522_v37, 0.0  ;;  %v1377_v55 = vadd.f32 %v1232_v46, %v321_v44  ;;  %v1379_v56 = vpop.f32.mrb[15].mxu1  ;;  %v528_v32 = vmul.f32 %v1383_v61, %v1383_v61  ;;  %v1409_v33 = vadd.f32 %v1232_v46, %v1262_v0 }
 0x104   :  { %v570_v57 = vadd.f32 %v569_v54, %v568_v41  ;;  %v457_v59 = vadd.f32 %v456_v53, %v455_v39  ;;  %v525_v2 = vmul.f32 %v1371_v43, %v1371_v43  ;;  %v460_v17 = vsel %vm430_vm2, %v1371_v43, 0.0 }
 0x105   :  { %v458_v4 = vsel %vm430_vm2, %v1377_v55, 0.0  ;;  %v524_v5 = vmul.f32 %v1377_v55, %v1377_v55  ;;  %v984_v9 = vpop.f32.mrb[16].mxu0  ;;  %v466_v0 = vsel %vm430_vm2, %v1383_v61, 0.0  ;;  %v529_v53 = vmul.f32 %v1403_v20, %v1403_v20 }
 0x106   :  { %v459_v11 = vadd.f32 %v458_v4, %v457_v59  ;;  %v572_v12 = vadd.f32 %v571_v62, %v570_v57  ;;  %v1393_v15 = vadd.f32 %v984_v9, %v1232_v46  ;;  %v331_v16 = vpop.f32.mrb[17].mxu0  ;;  %v1011_v52 = vpop.f32.mrb[16].mxu1  ;;  %v575_v34 = vsel %vm430_vm2, %v525_v2, 0.0 }
 0x107   :  { %v573_v18 = vsel %vm430_vm2, %v524_v5, 0.0  ;;  %v1399_v19 = vadd.f32 %v1232_v46, %v331_v16  ;;  %v421_v22 = vpop.f32.mrb[17].mxu1  ;;  %v1427_v57 = vadd.f32 %v1255_v60, %v1232_v46  ;;  %v581_v62 = vsel %vm430_vm2, %v528_v32, 0.0 }
 0x108   :  { %v574_v25 = vadd.f32 %v573_v18, %v572_v12  ;;  %v461_v27 = vadd.f32 %v460_v17, %v459_v11  ;;  %v527_v35 = vmul.f32 %v1393_v15, %v1393_v15  ;;  %v464_v39 = vsel %vm430_vm2, %v1393_v15, 0.0 }
 0x109   :  { %v462_v36 = vsel %vm430_vm2, %v1399_v19, 0.0  ;;  %v526_v50 = vmul.f32 %v1399_v19, %v1399_v19  ;;  %v530_v2 = vmul.f32 %v1409_v33, %v1409_v33  ;;  %v1435_v4 = vadd.f32 %v1232_v46, %v1281_v14 }
 0x10a   :  { %v463_v37 = vadd.f32 %v462_v36, %v461_v27  ;;  %v576_v38 = vadd.f32 %v575_v34, %v574_v25  ;;  %v579_v59 = vsel %vm430_vm2, %v527_v35, 0.0  ;;  %v468_v11 = vsel %vm430_vm2, %v1403_v20, 0.0 }
 0x10b   :  { %v577_v41 = vsel %vm430_vm2, %v526_v50, 0.0  ;;  %v470_v60 = vsel %vm430_vm2, %v1409_v33, 0.0  ;;  %v1442_v12 = vadd.f32 %v1008_v49, %v1232_v46  ;;  %v583_v16 = vsel %vm430_vm2, %v529_v53, 0.0 }
 0x10c   :  { %v578_v44 = vadd.f32 %v577_v41, %v576_v38  ;;  %v465_v54 = vadd.f32 %v464_v39, %v463_v37  ;;  %v531_v18 = vmul.f32 %v1427_v57, %v1427_v57  ;;  %v585_v14 = vsel %vm430_vm2, %v530_v2, 0.0 }
 0x10d   :  { %v1450_v27 = vadd.f32 %v1273_v10, %v1232_v46  ;;  %v532_v32 = vmul.f32 %v1435_v4, %v1435_v4  ;;  %v1456_v49 = vadd.f32 %v1232_v46, %v1301_v30  ;;  %v1459_v36 = vadd.f32 %v1011_v52, %v1232_v46 }
 0x10e   :  { %v467_v5 = vadd.f32 %v466_v0, %v465_v54  ;;  %v580_v9 = vadd.f32 %v579_v59, %v578_v44  ;;  %v472_v50 = vsel %vm430_vm2, %v1427_v57, 0.0  ;;  %v474_v37 = vsel %vm430_vm2, %v1435_v4, 0.0 }
 0x10f   :  { %v1466_v10 = vadd.f32 %v1232_v46, %v421_v22  ;;  %v587_v38 = vsel %vm430_vm2, %v531_v18, 0.0  ;;  %v1471_v30 = vadd.f32 %v1293_v26, %v1232_v46  ;;  %v533_v52 = vmul.f32 %v1450_v27, %v1450_v27 }
 0x110   :  { %v582_v17 = vadd.f32 %v581_v62, %v580_v9  ;;  %v469_v25 = vadd.f32 %v468_v11, %v467_v5  ;;  %v589_v0 = vsel %vm430_vm2, %v532_v32, 0.0  ;;  %v534_v44 = vmul.f32 %v1456_v49, %v1456_v49 }
 0x111   :  { %v1480_v22 = vadd.f32 %v1232_v46, %v1321_v47  ;;  %v476_v59 = vsel %vm430_vm2, %v1450_v27, 0.0  ;;  %v478_v26 = vsel %vm430_vm2, %v1456_v49, 0.0  ;;  %v535_v2 = vmul.f32 %v1471_v30, %v1471_v30 }
 0x112   :  { %v471_v34 = vadd.f32 %v470_v60, %v469_v25  ;;  %v584_v35 = vadd.f32 %v583_v16, %v582_v17  ;;  %v1490_v9 = vadd.f32 %v1313_v42, %v1232_v46  ;;  %v591_v47 = vsel %vm430_vm2, %v533_v52, 0.0 }
 0x113   :  { %v593_v11 = vsel %vm430_vm2, %v534_v44, 0.0  ;;  %v536_v60 = vmul.f32 %v1480_v22, %v1480_v22  ;;  %v1498_v16 = vadd.f32 %v1232_v46, %v1341_v7  ;;  %v480_v25 = vsel %vm430_vm2, %v1471_v30, 0.0 }
 0x114   :  { %v586_v39 = vadd.f32 %v585_v14, %v584_v35  ;;  %v473_v41 = vadd.f32 %v472_v50, %v471_v34  ;;  %v482_v42 = vsel %vm430_vm2, %v1480_v22, 0.0  ;;  %v595_v14 = vsel %vm430_vm2, %v535_v2, 0.0 }
 0x115   :  { %v537_v34 = vmul.f32 %v1490_v9, %v1490_v9  ;;  %v597_v50 = vsel %vm430_vm2, %v536_v60, 0.0  ;;  %v1510_v7 = vadd.f32 %v1333_v3, %v1232_v46  ;;  %v484_v52 = vsel %vm430_vm2, %v1490_v9, 0.0 }
 0x116   :  { %v475_v53 = vadd.f32 %v474_v37, %v473_v41  ;;  %v588_v54 = vadd.f32 %v587_v38, %v586_v39  ;;  %v538_v37 = vmul.f32 %v1498_v16, %v1498_v16  ;;  %v1516_v38 = vadd.f32 %v1232_v46, %v1361_v31 }
 0x117   :  { %v599_v44 = vsel %vm430_vm2, %v537_v34, 0.0  ;;  %v539_v31 = vmul.f32 %v1510_v7, %v1510_v7 }
 0x118   :  { %v590_v62 = vadd.f32 %v589_v0, %v588_v54  ;;  %v477_v5 = vadd.f32 %v476_v59, %v475_v53  ;;  %v486_v0 = vsel %vm430_vm2, %v1498_v16, 0.0  ;;  %v1525_v54 = vadd.f32 %v1353_v23, %v1232_v46 }
 0x119   :  { %v601_v59 = vsel %vm430_vm2, %v538_v37, 0.0  ;;  %v490_v23 = vsel %vm430_vm2, %v1516_v38, 0.0  ;;  %v543_v37 = vmul.f32 %v1442_v12, %v1442_v12 }
 0x11a   :  { %v479_v17 = vadd.f32 %v478_v26, %v477_v5  ;;  %v592_v18 = vadd.f32 %v591_v47, %v590_v62  ;;  %v540_v26 = vmul.f32 %v1516_v38, %v1516_v38  ;;  %v1534_v62 = vadd.f32 %v1232_v46, %v1379_v56 }
 0x11b   :  { %v488_v47 = vsel %vm430_vm2, %v1510_v7, 0.0 }
 0x11c   :  { %v594_v32 = vadd.f32 %v593_v11, %v592_v18  ;;  %v481_v35 = vadd.f32 %v480_v25, %v479_v17  ;;  %v603_v17 = vsel %vm430_vm2, %v539_v31, 0.0  ;;  %v541_v18 = vmul.f32 %v1525_v54, %v1525_v54 }
 0x11d   :  { %v605_v25 = vsel %vm430_vm2, %v540_v26, 0.0  ;;  %v542_v46 = vmul.f32 %v1534_v62, %v1534_v62  ;;  %v545_v26 = vmul.f32 %v1459_v36, %v1459_v36 }
 0x11e   :  { %v483_v39 = vadd.f32 %v482_v42, %v481_v35  ;;  %v596_v41 = vadd.f32 %v595_v14, %v594_v32  ;;  %v492_v14 = vsel %vm430_vm2, %v1525_v54, 0.0  ;;  %v494_v32 = vsel %vm430_vm2, %v1534_v62, 0.0 }
 0x120   :  { %v598_v53 = vadd.f32 %v597_v50, %v596_v41  ;;  %v485_v3 = vadd.f32 %v484_v52, %v483_v39  ;;  %v607_v50 = vsel %vm430_vm2, %v541_v18, 0.0  ;;  %v609_v39 = vsel %vm430_vm2, %v542_v46, 0.0 }
 0x121   :  { %v544_v41 = vmul.f32 %v1466_v10, %v1466_v10 }
 0x122   :  { %v487_v2 = vadd.f32 %v486_v0, %v485_v3  ;;  %v600_v5 = vadd.f32 %v599_v44, %v598_v53  ;;  %v496_v44 = vsel %vm430_vm2, %v1442_v12, 0.0  ;;  %v498_v53 = vsel %vm430_vm2, %v1466_v10, 0.0 }
 0x124   :  { %v602_v11 = vadd.f32 %v601_v59, %v600_v5  ;;  %v489_v60 = vadd.f32 %v488_v47, %v487_v2  ;;  %v611_v59 = vsel %vm430_vm2, %v543_v37, 0.0  ;;  %v613_v2 = vsel %vm430_vm2, %v544_v41, 0.0 }
 0x126   :  { %v491_v56 = vadd.f32 %v490_v23, %v489_v60  ;;  %v604_v42 = vadd.f32 %v603_v17, %v602_v11  ;;  %v500_v23 = vsel %vm430_vm2, %v1459_v36, 0.0  ;;  %v615_v17 = vsel %vm430_vm2, %v545_v26, 0.0 }
 0x128   :  { %v606_v34 = vadd.f32 %v605_v25, %v604_v42  ;;  %v493_v35 = vadd.f32 %v492_v14, %v491_v56 }
 0x12a   :  { %v495_v52 = vadd.f32 %v494_v32, %v493_v35  ;;  %v608_v0 = vadd.f32 %v607_v50, %v606_v34 }
 0x12c   :  { %v610_v3 = vadd.f32 %v609_v39, %v608_v0  ;;  %v497_v31 = vadd.f32 %v496_v44, %v495_v52 }
 0x12e   :  { %v499_v5 = vadd.f32 %v498_v53, %v497_v31  ;;  %v612_v47 = vadd.f32 %v611_v59, %v610_v3 }
 0x130   :  { %v501_v11 = vadd.f32 %v500_v23, %v499_v5  ;;  %v614_v60 = vadd.f32 %v613_v2, %v612_v47 }
 0x132   :  { %v502_v18 = vrot.slane %v501_v11, 4  ;;  %v616_v25 = vadd.f32 %v615_v17, %v614_v60 }
 0x134   :  { %v503_v46 = vadd.f32 %v502_v18, %v501_v11  ;;  %v617_v56 = vrot.slane %v616_v25, 4 }
 0x136   :  { %v504_v42 = vrot.slane %v503_v46, 2  ;;  %v618_v14 = vadd.f32 %v617_v56, %v616_v25 }
 0x138   :  { %v505_v32 = vadd.f32 %v504_v42, %v503_v46  ;;  %v619_v34 = vrot.slane %v618_v14, 2 }
 0x13a   :  { %v506_v35 = vrot.slane %v505_v32, 1  ;;  %v620_v50 = vadd.f32 %v619_v34, %v618_v14 }
 0x13c   :  { %v507_v37 = vadd.f32 %v506_v35, %v505_v32  ;;  %v621_v39 = vrot.slane %v620_v50, 1 }
 0x13e   :  { %v1567_v41 = vmul.f32 0.0034722222, %v507_v37  ;;  %v622_v52 = vadd.f32 %v621_v39, %v620_v50 }
 0x140   :  { %v623_v0 = vmul.f32 0.0034722222, %v622_v52  ;;  %v624_v44 = vmul.f32 %v1567_v41, %v1567_v41  ;;  %v641_v3 = vsub.f32 %v1377_v55, %v1567_v41  ;;  %v642_v31 = vsub.f32 %v1371_v43, %v1567_v41 }
 0x141   :  { %v643_v59 = vsub.f32 %v1399_v19, %v1567_v41  ;;  %v644_v26 = vsub.f32 %v1393_v15, %v1567_v41  ;;  %v648_v5 = vsub.f32 %v1427_v57, %v1567_v41  ;;  %v649_v47 = vsub.f32 %v1435_v4, %v1567_v41 }
 0x142   :  { %v625_v53 = vsub.f32 %v623_v0, %v624_v44  ;;  %v650_v23 = vsub.f32 %v1450_v27, %v1567_v41  ;;  %v651_v55 = vsub.f32 %v1456_v49, %v1567_v41  ;;  %v652_v43 = vsub.f32 %v1471_v30, %v1567_v41 }
 0x143   :  { %v653_v19 = vsub.f32 %v1480_v22, %v1567_v41  ;;  %v654_v15 = vsub.f32 %v1490_v9, %v1567_v41  ;;  %v655_v57 = vsub.f32 %v1498_v16, %v1567_v41  ;;  %v656_v4 = vsub.f32 %v1510_v7, %v1567_v41 }
 0x144   :  { %v626_v2 = vmax.f32 %v625_v53, 0.0  ;;  %v657_v27 = vsub.f32 %v1516_v38, %v1567_v41  ;;  %v658_v49 = vsub.f32 %v1525_v54, %v1567_v41  ;;  %v659_v30 = vsub.f32 %v1534_v62, %v1567_v41  ;;  %v899_v53 = vld [vmem:[%s1769_s3] ss:$0 sm:$0xff] }
 0x145   :  { %v660_v22 = vsub.f32 %v1442_v12, %v1567_v41  ;;  %v661_v9 = vsub.f32 %v1466_v10, %v1567_v41  ;;  %v662_v16 = vsub.f32 %v1459_v36, %v1567_v41  ;;  %v627_v7 = vsub.f32 %v1240_v51, %v1567_v41 }
 0x146   :  { %v663_v11 = vadd.f32 1e-05, %v626_v2  ;;  %v628_v38 = vsub.f32 %v1235_v48, %v1567_v41  ;;  %v629_v54 = vsub.f32 %v1260_v63, %v1567_v41  ;;  %v630_v12 = vsub.f32 %v1253_v58, %v1567_v41 }
 0x147   :  { %v631_v10 = vsub.f32 %v1279_v13, %v1567_v41  ;;  %v632_v36 = vsub.f32 %v1271_v8, %v1567_v41  ;;  %v633_v62 = vsub.f32 %v1299_v29, %v1567_v41  ;;  %v634_v51 = vsub.f32 %v1291_v24, %v1567_v41 }
 0x148   :  { %1032 = vrsqrt.f32 %v663_v11  ;;  %v635_v48 = vsub.f32 %v1319_v45, %v1567_v41  ;;  %v636_v63 = vsub.f32 %v1311_v40, %v1567_v41  ;;  %v637_v58 = vsub.f32 %v1339_v6, %v1567_v41 }
 0x149   :  { %v638_v13 = vsub.f32 %v1331_v1, %v1567_v41  ;;  %v639_v8 = vsub.f32 %v1359_v28, %v1567_v41  ;;  %v640_v29 = vsub.f32 %v1351_v21, %v1567_v41  ;;  %v645_v24 = vsub.f32 %v1383_v61, %v1567_v41 }
 0x14a   :  { %v646_v45 = vsub.f32 %v1403_v20, %v1567_v41  ;;  %v647_v40 = vsub.f32 %v1409_v33, %v1567_v41 }
 0x152   :  { %v1033_v60 = vpop.eup %1032 }
 0x153   :  { %v665_v6 = vmul.f32 %v1033_v60, %v627_v7  ;;  %v666_v17 = vmul.f32 %v1033_v60, %v628_v38  ;;  %v667_v18 = vmul.f32 %v1033_v60, %v629_v54  ;;  %v668_v1 = vmul.f32 %v1033_v60, %v630_v12 }
 0x154   :  { %v669_v25 = vmul.f32 %v1033_v60, %v631_v10  ;;  %v670_v46 = vmul.f32 %v1033_v60, %v632_v36  ;;  %v671_v28 = vmul.f32 %v1033_v60, %v633_v62  ;;  %v672_v56 = vmul.f32 %v1033_v60, %v634_v51 }
 0x155   :  { %v673_v42 = vmul.f32 %v1033_v60, %v635_v48  ;;  %v674_v14 = vmul.f32 %v1033_v60, %v636_v63  ;;  %v675_v21 = vmul.f32 %v1033_v60, %v637_v58  ;;  %v676_v32 = vmul.f32 %v1033_v60, %v638_v13 }
 0x156   :  { %v677_v34 = vmul.f32 %v1033_v60, %v639_v8  ;;  %v678_v61 = vmul.f32 %v1033_v60, %v640_v29  ;;  %v679_v35 = vmul.f32 %v1033_v60, %v641_v3  ;;  %v680_v50 = vmul.f32 %v1033_v60, %v642_v31 }
 0x157   :  { %v681_v20 = vmul.f32 %v1033_v60, %v643_v59  ;;  %v682_v37 = vmul.f32 %v1033_v60, %v644_v26  ;;  %v683_v39 = vmul.f32 %v1033_v60, %v645_v24  ;;  %v684_v33 = vmul.f32 %v1033_v60, %v646_v45  ;;  %v900_v24 = vld [vmem:[%s1770_s4] ss:$0 sm:$0xff] }
 0x158   :  { %v685_v41 = vmul.f32 %v1033_v60, %v647_v40  ;;  %v686_v52 = vmul.f32 %v1033_v60, %v648_v5  ;;  %v687_v0 = vmul.f32 %v1033_v60, %v649_v47  ;;  %v688_v44 = vmul.f32 %v1033_v60, %v650_v23 }
 0x159   :  { %v689_v2 = vmul.f32 %v1033_v60, %v651_v55  ;;  %v690_v11 = vmul.f32 %v1033_v60, %v652_v43  ;;  %v691_v7 = vmul.f32 %v1033_v60, %v653_v19  ;;  %v692_v38 = vmul.f32 %v1033_v60, %v654_v15 }
 0x15a   :  { %v693_v54 = vmul.f32 %v1033_v60, %v655_v57  ;;  %v694_v12 = vmul.f32 %v1033_v60, %v656_v4  ;;  %v695_v3 = vmul.f32 %v1033_v60, %v657_v27  ;;  %v696_v31 = vmul.f32 %v1033_v60, %v658_v49 }
 0x15b   :  { %v697_v59 = vmul.f32 %v1033_v60, %v659_v30  ;;  %v698_v26 = vmul.f32 %v1033_v60, %v660_v22  ;;  %v699_v10 = vmul.f32 %v1033_v60, %v661_v9  ;;  %v700_v36 = vmul.f32 %v1033_v60, %v662_v16 }
 0x15c   :  { %v707_v62 = vmul.f32 %v899_v53, %v665_v6  ;;  %v708_v5 = vmul.f32 %v899_v53, %v666_v17  ;;  %v709_v47 = vmul.f32 %v899_v53, %v667_v18  ;;  %v710_v23 = vmul.f32 %v899_v53, %v668_v1 }
 0x15d   :  { %v711_v51 = vmul.f32 %v899_v53, %v669_v25  ;;  %v712_v48 = vmul.f32 %v899_v53, %v670_v46  ;;  %v713_v63 = vmul.f32 %v899_v53, %v671_v28  ;;  %v714_v58 = vmul.f32 %v899_v53, %v672_v56 }
 0x15e   :  { %v715_v55 = vmul.f32 %v899_v53, %v673_v42  ;;  %v716_v43 = vmul.f32 %v899_v53, %v674_v14  ;;  %v717_v19 = vmul.f32 %v899_v53, %v675_v21  ;;  %v718_v15 = vmul.f32 %v899_v53, %v676_v32 }
 0x15f   :  { %v719_v57 = vmul.f32 %v899_v53, %v677_v34  ;;  %v720_v4 = vmul.f32 %v899_v53, %v678_v61  ;;  %v721_v27 = vmul.f32 %v899_v53, %v679_v35  ;;  %v722_v49 = vmul.f32 %v899_v53, %v680_v50 }
 0x160   :  { %v723_v30 = vmul.f32 %v899_v53, %v681_v20  ;;  %v724_v22 = vmul.f32 %v899_v53, %v682_v37  ;;  %v725_v9 = vmul.f32 %v899_v53, %v683_v39  ;;  %v726_v16 = vmul.f32 %v899_v53, %v684_v33 }
 0x161   :  { %v727_v13 = vmul.f32 %v899_v53, %v685_v41  ;;  %v728_v8 = vmul.f32 %v899_v53, %v686_v52  ;;  %v729_v60 = vmul.f32 %v899_v53, %v687_v0  ;;  %v730_v29 = vmul.f32 %v899_v53, %v688_v44 }
 0x162   :  { %v731_v45 = vmul.f32 %v899_v53, %v689_v2  ;;  %v732_v40 = vmul.f32 %v899_v53, %v690_v11  ;;  %v733_v6 = vmul.f32 %v899_v53, %v691_v7  ;;  %v734_v17 = vmul.f32 %v899_v53, %v692_v38 }
 0x163   :  { %v735_v18 = vmul.f32 %v899_v53, %v693_v54  ;;  %v736_v1 = vmul.f32 %v899_v53, %v694_v12  ;;  %v737_v25 = vmul.f32 %v899_v53, %v695_v3  ;;  %v738_v46 = vmul.f32 %v899_v53, %v696_v31 }
 0x164   :  { %v739_v28 = vmul.f32 %v899_v53, %v697_v59  ;;  %v740_v56 = vmul.f32 %v899_v53, %v698_v26  ;;  %v741_v42 = vmul.f32 %v899_v53, %v699_v10  ;;  %v742_v14 = vmul.f32 %v899_v53, %v700_v36 }
 0x165   :  { %v1649_v21 = vadd.f32 %v900_v24, %v707_v62  ;;  %v1651_v32 = vadd.f32 %v900_v24, %v708_v5  ;;  %v1653_v34 = vadd.f32 %v900_v24, %v709_v47  ;;  %v1655_v61 = vadd.f32 %v900_v24, %v710_v23 }
 0x166   :  { %v1657_v35 = vadd.f32 %v900_v24, %v711_v51  ;;  %v1659_v50 = vadd.f32 %v900_v24, %v712_v48  ;;  %v1661_v20 = vadd.f32 %v900_v24, %v713_v63  ;;  %v1663_v37 = vadd.f32 %v900_v24, %v714_v58 }
 0x167   :  { %v1665_v39 = vadd.f32 %v900_v24, %v715_v55  ;;  %v1667_v33 = vadd.f32 %v900_v24, %v716_v43  ;;  %v1669_v41 = vadd.f32 %v900_v24, %v717_v19  ;;  %v1671_v52 = vadd.f32 %v900_v24, %v718_v15 }
 0x168   :  { %v1673_v0 = vadd.f32 %v900_v24, %v719_v57  ;;  %v1675_v44 = vadd.f32 %v900_v24, %v720_v4  ;;  %v1677_v53 = vadd.f32 %v900_v24, %v721_v27  ;;  %v1679_v2 = vadd.f32 %v900_v24, %v722_v49 }
 0x169   :  { %v1681_v11 = vadd.f32 %v900_v24, %v723_v30  ;;  %v1683_v7 = vadd.f32 %v900_v24, %v724_v22  ;;  %v1685_v38 = vadd.f32 %v900_v24, %v725_v9  ;;  %v1687_v54 = vadd.f32 %v900_v24, %v726_v16 }
 0x16a   :  { %v1689_v12 = vadd.f32 %v900_v24, %v727_v13  ;;  %v1691_v3 = vadd.f32 %v900_v24, %v728_v8  ;;  %v1693_v31 = vadd.f32 %v900_v24, %v729_v60  ;;  %v1695_v59 = vadd.f32 %v900_v24, %v730_v29 }
 0x16b   :  { %v1697_v26 = vadd.f32 %v900_v24, %v731_v45  ;;  %v1699_v10 = vadd.f32 %v900_v24, %v732_v40  ;;  %v1701_v36 = vadd.f32 %v900_v24, %v733_v6  ;;  %v776_v62 = vadd.f32 %v900_v24, %v734_v17 }
 0x16c   :  { %v777_v5 = vadd.f32 %v900_v24, %v735_v18  ;;  %v778_v47 = vadd.f32 %v900_v24, %v736_v1  ;;  %v779_v23 = vadd.f32 %v900_v24, %v737_v25  ;;  %v780_v51 = vadd.f32 %v900_v24, %v738_v46 }
 0x16d   :  { %v781_v48 = vadd.f32 %v900_v24, %v739_v28  ;;  %v782_v63 = vadd.f32 %v900_v24, %v740_v56  ;;  %v783_v58 = vadd.f32 %v900_v24, %v741_v42  ;;  %v784_v55 = vadd.f32 %v900_v24, %v742_v14 }
 0x16e   :  { %v785_v43 = vmax.f32 %v1649_v21, 0.0  ;;  %v786_v19 = vmax.f32 %v1651_v32, 0.0  ;;  %v787_v15 = vmax.f32 %v1653_v34, 0.0  ;;  %v788_v57 = vmax.f32 %v1655_v61, 0.0 }
 0x16f   :  { %v789_v4 = vmax.f32 %v1657_v35, 0.0  ;;  %v790_v27 = vmax.f32 %v1659_v50, 0.0  ;;  %v791_v49 = vmax.f32 %v1661_v20, 0.0  ;;  %v792_v30 = vmax.f32 %v1663_v37, 0.0 }
 0x170   :  { %v793_v22 = vmax.f32 %v1665_v39, 0.0  ;;  %v794_v9 = vmax.f32 %v1667_v33, 0.0  ;;  %v795_v16 = vmax.f32 %v1669_v41, 0.0  ;;  %v796_v13 = vmax.f32 %v1671_v52, 0.0 }
 0x171   :  { %v797_v8 = vmax.f32 %v1673_v0, 0.0  ;;  %v798_v60 = vmax.f32 %v1675_v44, 0.0  ;;  %v799_v29 = vmax.f32 %v1677_v53, 0.0  ;;  %v800_v24 = vmax.f32 %v1679_v2, 0.0 }
 0x172   :  { %v801_v45 = vmax.f32 %v1681_v11, 0.0  ;;  %v802_v40 = vmax.f32 %v1683_v7, 0.0  ;;  %v803_v6 = vmax.f32 %v1685_v38, 0.0  ;;  %v804_v17 = vmax.f32 %v1687_v54, 0.0 }
 0x173   :  { %v805_v18 = vmax.f32 %v1689_v12, 0.0  ;;  %v806_v1 = vmax.f32 %v1691_v3, 0.0  ;;  %v807_v25 = vmax.f32 %v1693_v31, 0.0  ;;  %v808_v46 = vmax.f32 %v1695_v59, 0.0 }
 0x174   :  { %v809_v28 = vmax.f32 %v1697_v26, 0.0  ;;  %v810_v56 = vmax.f32 %v1699_v10, 0.0  ;;  %v811_v42 = vmax.f32 %v1701_v36, 0.0  ;;  %v812_v14 = vmax.f32 %v776_v62, 0.0 }
 0x175   :  { %v813_v21 = vmax.f32 %v777_v5, 0.0  ;;  %v814_v32 = vmax.f32 %v778_v47, 0.0  ;;  %v815_v34 = vmax.f32 %v779_v23, 0.0  ;;  %v816_v61 = vmax.f32 %v780_v51, 0.0 }
 0x176   :  { %v817_v35 = vmax.f32 %v781_v48, 0.0  ;;  %v818_v50 = vmax.f32 %v782_v63, 0.0  ;;  %v819_v20 = vmax.f32 %v783_v58, 0.0  ;;  %v820_v37 = vmax.f32 %v784_v55, 0.0 }
 0x177   :  { %v821_v39 = vmax.f32 %v785_v43, %v794_v9  ;;  %v822_v33 = vmax.f32 %v786_v19, %v795_v16  ;;  %v823_v41 = vmax.f32 %v787_v15, %v796_v13  ;;  %v824_v52 = vmax.f32 %v788_v57, %v797_v8 }
 0x178   :  { %v825_v0 = vmax.f32 %v789_v4, %v798_v60  ;;  %v826_v44 = vmax.f32 %v790_v27, %v799_v29  ;;  %v827_v53 = vmax.f32 %v791_v49, %v800_v24  ;;  %v828_v2 = vmax.f32 %v792_v30, %v801_v45 }
 0x179   :  { %v829_v11 = vmax.f32 %v793_v22, %v802_v40  ;;  %v830_v7 = vmax.f32 %v803_v6, %v812_v14  ;;  %v831_v38 = vmax.f32 %v804_v17, %v813_v21  ;;  %v832_v54 = vmax.f32 %v805_v18, %v814_v32 }
 0x17a   :  { %v833_v12 = vmax.f32 %v806_v1, %v815_v34  ;;  %v834_v3 = vmax.f32 %v807_v25, %v816_v61  ;;  %v835_v31 = vmax.f32 %v808_v46, %v817_v35  ;;  %v836_v59 = vmax.f32 %v809_v28, %v818_v50 }
 0x17b   :  { %v837_v26 = vmax.f32 %v810_v56, %v819_v20  ;;  %v838_v10 = vmax.f32 %v811_v42, %v820_v37  ;;  %v839_v36 = vmax.f32 %v821_v39, %v830_v7  ;;  %v840_v62 = vmax.f32 %v822_v33, %v831_v38 }
 0x17c   :  { %v841_v5 = vmax.f32 %v823_v41, %v832_v54  ;;  %v842_v47 = vmax.f32 %v824_v52, %v833_v12  ;;  %v843_v23 = vmax.f32 %v825_v0, %v834_v3  ;;  %v844_v51 = vmax.f32 %v826_v44, %v835_v31 }
 0x17d   :  { %v845_v48 = vmax.f32 %v827_v53, %v836_v59  ;;  %v846_v63 = vmax.f32 %v828_v2, %v837_v26  ;;  %v847_v58 = vmax.f32 %v829_v11, %v838_v10  ;;  %848 = vst.msk [vmem:[%s1771_s5] sm:$0xff] %vm430_vm2, %v839_v36  ;;  %849 = vst.msk [vmem:[%s1771_s5 + $0x8] sm:$0xff] %vm430_vm2, %v840_v62 }
 0x17e   :  { %850 = vst.msk [vmem:[%s1771_s5 + $0x10] sm:$0xff] %vm430_vm2, %v841_v5  ;;  %851 = vst.msk [vmem:[%s1771_s5 + $0x18] sm:$0xff] %vm430_vm2, %v842_v47 }
 0x17f   :  { %852 = vst.msk [vmem:[%s1771_s5 + $0x20] sm:$0xff] %vm430_vm2, %v843_v23  ;;  %853 = vst.msk [vmem:[%s1771_s5 + $0x28] sm:$0xff] %vm430_vm2, %v844_v51 }
 0x180   :  { %854 = vst.msk [vmem:[%s1771_s5 + $0x30] sm:$0xff] %vm430_vm2, %v845_v48  ;;  %855 = vst.msk [vmem:[%s1771_s5 + $0x38] sm:$0xff] %vm430_vm2, %v846_v63 }
 0x181   :  { %856 = vst.msk [vmem:[%s1771_s5 + $0x40] sm:$0xff] %vm430_vm2, %v847_v58 }

// kernel: cnn_al_forward.3
= control target key start
LH: loop header
LB: loop body
LE: loop exit
PB: predicated region body
PF: predicated region fallthrough
CT: control target
= control target key end

     0   :  { %s2547_s0 = inlined_call_operand.vmem [shape: f32[32,800], index: 0, kind: input, shape index: {}]   ;;  %s2548_s1 = inlined_call_operand.vmem [shape: f32[800,64], index: 1, kind: input, shape index: {}]   ;;  %s2549_s2 = inlined_call_operand.vmem [shape: f32[1,64], index: 2, kind: input, shape index: {}]   ;;  %s2550_s3 = inlined_call_operand.vmem [shape: f32[1,64], index: 3, kind: input, shape index: {}]   ;;  %s2551_s4 = inlined_call_operand.vmem [shape: f32[1,64], index: 4, kind: input, shape index: {}]   ;;  %s2552_s5 = inlined_call_operand.vmem [shape: f32[4,64,64], index: 5, kind: input, shape index: {}]   ;;  %s2553_s6 = inlined_call_operand.vmem [shape: f32[1,64], index: 6, kind: input, shape index: {}]   ;;  %s2554_s7 = inlined_call_operand.vmem [shape: f32[64,20], index: 7, kind: input, shape index: {}]   ;;  %s2555_s8 = inlined_call_operand.vmem [shape: f32[1,20], index: 8, kind: input, shape index: {}]   ;;  %s2556_s9 = inlined_call_operand.vmem [shape: f32[20,64], index: 9, kind: input, shape index: {}]   ;;  %s2557_s10 = inlined_call_operand.vmem [shape: f32[1,64], index: 10, kind: input, shape index: {}]   ;;  %s2558_s11 = inlined_call_operand.vmem [shape: f32[64,2], index: 11, kind: input, shape index: {}]   ;;  %s2559_s12 = inlined_call_operand.vmem [shape: f32[1,2], index: 12, kind: input, shape index: {}]   ;;  %s2560_s13 = inlined_call_operand.vmem [shape: f32[2,20], index: 13, kind: output, shape index: {0}]   ;;  %s2561_s14 = inlined_call_operand.hbm [shape: f32[2,2], index: 14, kind: output, shape index: {1}]  }
   0x1   :  { %v91_v0 = vld [vmem:[%s2548_s1 + $0x80] sm:$0xff]  ;;  %v92_v1 = vld [vmem:[%s2548_s1 + $0x88] sm:$0xff]  ;;  %v93_v11 = vld [vmem:[%s2548_s1 + $0x90] sm:$0xff] }
   0x2   :  { %v75_v2 = vld [vmem:[%s2548_s1] sm:$0xff]  ;;  %v1615_v3 = vpack.c.bf16 %v92_v1, %v91_v0  ;;  %v76_v4 = vld [vmem:[%s2548_s1 + $0x8] sm:$0xff]  ;;  %v94_v13 = vld [vmem:[%s2548_s1 + $0x98] sm:$0xff] }
   0x3   :  { %v123_v5 = vld [vmem:[%s2548_s1 + $0x180] sm:$0xff]  ;;  %v124_v6 = vld [vmem:[%s2548_s1 + $0x188] sm:$0xff]  ;;  %v1617_v7 = vpack.c.bf16 %v76_v4, %v75_v2  ;;  %v77_v14 = vld [vmem:[%s2548_s1 + $0x10] sm:$0xff]  ;;  %v1619_v16 = vpack.c.bf16 %v94_v13, %v93_v11 }
   0x4   :  { %v1647_v8 = vpack.c.bf16 %v124_v6, %v123_v5  ;;  %v107_v9 = vld [vmem:[%s2548_s1 + $0x100] sm:$0xff]  ;;  %v108_v10 = vld [vmem:[%s2548_s1 + $0x108] sm:$0xff]  ;;  %1616 = vmatprep.subr.bf16.mxu0 %v1615_v3  ;;  %v78_v15 = vld [vmem:[%s2548_s1 + $0x18] sm:$0xff] }
   0x5   :  { %v1649_v12 = vpack.c.bf16 %v108_v10, %v107_v9  ;;  %1618 = vmatpush3.bf16.msra.mxu0 %v1617_v7  ;;  %v1621_v17 = vpack.c.bf16 %v78_v15, %v77_v14  ;;  %v125_v18 = vld [vmem:[%s2548_s1 + $0x190] sm:$0xff]  ;;  %v126_v19 = vld [vmem:[%s2548_s1 + $0x198] sm:$0xff]  ;;  %v95_v23 = vld [vmem:[%s2548_s1 + $0xa0] sm:$0xff] }
   0x6   :  { %1648 = vmatprep.subr.bf16.mxu1 %v1647_v8  ;;  %v109_v20 = vld [vmem:[%s2548_s1 + $0x110] sm:$0xff]  ;;  %v1651_v21 = vpack.c.bf16 %v126_v19, %v125_v18  ;;  %v110_v22 = vld [vmem:[%s2548_s1 + $0x118] sm:$0xff]  ;;  %v96_v24 = vld [vmem:[%s2548_s1 + $0xa8] sm:$0xff]  ;;  %1620 = vmatprep.subr.bf16.mxu0 %v1619_v16 }
   0x7   :  { %1650 = vmatpush3.bf16.msra.mxu1 %v1649_v12  ;;  %v1653_v25 = vpack.c.bf16 %v110_v22, %v109_v20  ;;  %v1623_v26 = vpack.c.bf16 %v96_v24, %v95_v23  ;;  %v79_v27 = vld [vmem:[%s2548_s1 + $0x20] sm:$0xff]  ;;  %v80_v28 = vld [vmem:[%s2548_s1 + $0x28] sm:$0xff]  ;;  %v97_v35 = vld [vmem:[%s2548_s1 + $0xb0] sm:$0xff] }
   0x8   :  { %v127_v29 = vld [vmem:[%s2548_s1 + $0x1a0] sm:$0xff]  ;;  %1652 = vmatprep.subr.bf16.mxu1 %v1651_v21  ;;  %v128_v30 = vld [vmem:[%s2548_s1 + $0x1a8] sm:$0xff]  ;;  %v1625_v33 = vpack.c.bf16 %v80_v28, %v79_v27  ;;  %v98_v36 = vld [vmem:[%s2548_s1 + $0xb8] sm:$0xff] }
   0x9   :  { %v111_v31 = vld [vmem:[%s2548_s1 + $0x120] sm:$0xff]  ;;  %v112_v32 = vld [vmem:[%s2548_s1 + $0x128] sm:$0xff]  ;;  %1622 = vmatpush3.bf16.msra.mxu0 %v1621_v17  ;;  %v1655_v34 = vpack.c.bf16 %v128_v30, %v127_v29  ;;  %v81_v37 = vld [vmem:[%s2548_s1 + $0x30] sm:$0xff]  ;;  %v1627_v39 = vpack.c.bf16 %v98_v36, %v97_v35 }
   0xa   :  { %1624 = vmatprep.subr.bf16.mxu0 %v1623_v26  ;;  %v1657_v38 = vpack.c.bf16 %v112_v32, %v111_v31  ;;  %v82_v40 = vld [vmem:[%s2548_s1 + $0x38] sm:$0xff]  ;;  %v129_v41 = vld [vmem:[%s2548_s1 + $0x1b0] sm:$0xff]  ;;  %v99_v46 = vld [vmem:[%s2548_s1 + $0xc0] sm:$0xff] }
   0xb   :  { %1654 = vmatpush3.bf16.msra.mxu1 %v1653_v25  ;;  %v130_v42 = vld [vmem:[%s2548_s1 + $0x1b8] sm:$0xff]  ;;  %v113_v44 = vld [vmem:[%s2548_s1 + $0x130] sm:$0xff]  ;;  %v100_v47 = vld [vmem:[%s2548_s1 + $0xc8] sm:$0xff]  ;;  %v1629_v48 = vpack.c.bf16 %v82_v40, %v81_v37 }
   0xc   :  { %1656 = vmatprep.subr.bf16.mxu1 %v1655_v34  ;;  %v1659_v43 = vpack.c.bf16 %v130_v42, %v129_v41  ;;  %v114_v45 = vld [vmem:[%s2548_s1 + $0x138] sm:$0xff]  ;;  %v131_v49 = vld [vmem:[%s2548_s1 + $0x1c0] sm:$0xff]  ;;  %v132_v50 = vld [vmem:[%s2548_s1 + $0x1c8] sm:$0xff]  ;;  %v1631_v52 = vpack.c.bf16 %v100_v47, %v99_v46 }
   0xd   :  { %1626 = vmatpush3.bf16.msra.mxu0 %v1625_v33  ;;  %v1661_v51 = vpack.c.bf16 %v114_v45, %v113_v44  ;;  %v83_v53 = vld [vmem:[%s2548_s1 + $0x40] sm:$0xff]  ;;  %v84_v54 = vld [vmem:[%s2548_s1 + $0x48] sm:$0xff]  ;;  %v1663_v56 = vpack.c.bf16 %v132_v50, %v131_v49  ;;  %v101_v58 = vld [vmem:[%s2548_s1 + $0xd0] sm:$0xff] }
   0xe   :  { %1628 = vmatprep.subr.bf16.mxu0 %v1627_v39  ;;  %v115_v55 = vld [vmem:[%s2548_s1 + $0x140] sm:$0xff]  ;;  %v116_v57 = vld [vmem:[%s2548_s1 + $0x148] sm:$0xff]  ;;  %v102_v59 = vld [vmem:[%s2548_s1 + $0xd8] sm:$0xff]  ;;  %v1633_v62 = vpack.c.bf16 %v84_v54, %v83_v53 }
   0xf   :  { %1658 = vmatpush3.bf16.msra.mxu1 %v1657_v38  ;;  %v133_v60 = vld [vmem:[%s2548_s1 + $0x1d0] sm:$0xff]  ;;  %v134_v61 = vld [vmem:[%s2548_s1 + $0x1d8] sm:$0xff]  ;;  %v1665_v63 = vpack.c.bf16 %v116_v57, %v115_v55  ;;  %v1635_v0 = vpack.c.bf16 %v102_v59, %v101_v58  ;;  %v103_v6 = vld [vmem:[%s2548_s1 + $0xe0] sm:$0xff] }
  0x10   :  { %1660 = vmatprep.subr.bf16.mxu1 %v1659_v43  ;;  %v85_v1 = vld [vmem:[%s2548_s1 + $0x50] sm:$0xff]  ;;  %v86_v2 = vld [vmem:[%s2548_s1 + $0x58] sm:$0xff]  ;;  %v1667_v4 = vpack.c.bf16 %v134_v61, %v133_v60  ;;  %v104_v7 = vld [vmem:[%s2548_s1 + $0xe8] sm:$0xff] }
  0x11   :  { %1630 = vmatpush3.bf16.msra.mxu0 %v1629_v48  ;;  %v117_v3 = vld [vmem:[%s2548_s1 + $0x150] sm:$0xff]  ;;  %v118_v5 = vld [vmem:[%s2548_s1 + $0x158] sm:$0xff]  ;;  %v135_v8 = vld [vmem:[%s2548_s1 + $0x1e0] sm:$0xff]  ;;  %v1637_v10 = vpack.c.bf16 %v86_v2, %v85_v1  ;;  %v1639_v14 = vpack.c.bf16 %v104_v7, %v103_v6 }
  0x12   :  { %1632 = vmatprep.subr.bf16.mxu0 %v1631_v52  ;;  %v136_v9 = vld [vmem:[%s2548_s1 + $0x1e8] sm:$0xff]  ;;  %v87_v11 = vld [vmem:[%s2548_s1 + $0x60] sm:$0xff]  ;;  %v1669_v13 = vpack.c.bf16 %v118_v5, %v117_v3  ;;  %v105_v19 = vld [vmem:[%s2548_s1 + $0xf0] sm:$0xff] }
  0x13   :  { %1662 = vmatpush3.bf16.msra.mxu1 %v1661_v51  ;;  %v48_v12 = vld [vmem:[%s2547_s0 + $0x8] sm:$0xff]  ;;  %v119_v16 = vld [vmem:[%s2548_s1 + $0x160] sm:$0xff]  ;;  %v1671_v18 = vpack.c.bf16 %v136_v9, %v135_v8  ;;  %v106_v20 = vld [vmem:[%s2548_s1 + $0xf8] sm:$0xff] }
  0x14   :  { %1664 = vmatprep.subr.bf16.mxu1 %v1663_v56  ;;  %v88_v15 = vld [vmem:[%s2548_s1 + $0x68] sm:$0xff]  ;;  %261 = vmatprep.mubr.f32.mxu0 %v48_v12  ;;  %v50_v21 = vld [vmem:[%s2547_s0 + $0x18] sm:$0xff]  ;;  %v137_v22 = vld [vmem:[%s2548_s1 + $0x1f0] sm:$0xff]  ;;  %v1643_v26 = vpack.c.bf16 %v106_v20, %v105_v19 }
  0x15   :  { %1634 = vmatpush3.bf16.msra.mxu0 %v1633_v62  ;;  %v120_v17 = vld [vmem:[%s2548_s1 + $0x168] sm:$0xff]  ;;  %v138_v23 = vld [vmem:[%s2548_s1 + $0x1f8] sm:$0xff]  ;;  %346 = vmatprep.mubr.f32.mxu1 %v50_v21  ;;  %v1641_v24 = vpack.c.bf16 %v88_v15, %v87_v11  ;;  %v89_v27 = vld [vmem:[%s2548_s1 + $0x70] sm:$0xff] }
  0x16   :  { %1636 = vmatprep.subr.bf16.mxu0 %v1635_v0  ;;  %v1673_v25 = vpack.c.bf16 %v120_v17, %v119_v16  ;;  %v90_v28 = vld [vmem:[%s2548_s1 + $0x78] sm:$0xff]  ;;  %v121_v29 = vld [vmem:[%s2548_s1 + $0x170] sm:$0xff]  ;;  %v1675_v30 = vpack.c.bf16 %v138_v23, %v137_v22  ;;  %v155_v32 = vld [vmem:[%s2548_s1 + $0x280] sm:$0xff] }
  0x17   :  { %1666 = vmatpush3.bf16.msra.mxu1 %v1665_v63  ;;  %v122_v31 = vld [vmem:[%s2548_s1 + $0x178] sm:$0xff]  ;;  %v156_v33 = vld [vmem:[%s2548_s1 + $0x288] sm:$0xff]  ;;  %v1645_v34 = vpack.c.bf16 %v90_v28, %v89_v27  ;;  %v139_v37 = vld [vmem:[%s2548_s1 + $0x200] sm:$0xff] }
  0x18   :  { %1668 = vmatprep.subr.bf16.mxu1 %v1667_v4  ;;  %v1677_v35 = vpack.c.bf16 %v122_v31, %v121_v29  ;;  %v1679_v36 = vpack.c.bf16 %v156_v33, %v155_v32  ;;  %v140_v38 = vld [vmem:[%s2548_s1 + $0x208] sm:$0xff]  ;;  %v157_v39 = vld [vmem:[%s2548_s1 + $0x290] sm:$0xff]  ;;  %v158_v40 = vld [vmem:[%s2548_s1 + $0x298] sm:$0xff] }
  0x19   :  { %1638 = vmatpush3.bf16.msra.mxu0 %v1637_v10  ;;  %v47_v41 = vld [vmem:[%s2547_s0] sm:$0xff]  ;;  %v1681_v42 = vpack.c.bf16 %v140_v38, %v139_v37  ;;  %v49_v43 = vld [vmem:[%s2547_s0 + $0x10] sm:$0xff]  ;;  %v1683_v44 = vpack.c.bf16 %v158_v40, %v157_v39  ;;  %v142_v46 = vld [vmem:[%s2548_s1 + $0x218] sm:$0xff] }
  0x1a   :  { %1640 = vmatprep.subr.bf16.mxu0 %v1639_v14  ;;  %v141_v45 = vld [vmem:[%s2548_s1 + $0x210] sm:$0xff]  ;;  %v159_v47 = vld [vmem:[%s2548_s1 + $0x2a0] sm:$0xff]  ;;  %v160_v48 = vld [vmem:[%s2548_s1 + $0x2a8] sm:$0xff] }
  0x1b   :  { %1670 = vmatpush3.bf16.msra.mxu1 %v1669_v13  ;;  %v55_v49 = vld [vmem:[%s2547_s0 + $0x40] sm:$0xff]  ;;  %v57_v51 = vld [vmem:[%s2547_s0 + $0x50] sm:$0xff]  ;;  %v172_v52 = vld [vmem:[%s2548_s1 + $0x308] sm:$0xff]  ;;  %v1685_v53 = vpack.c.bf16 %v142_v46, %v141_v45  ;;  %v1687_v57 = vpack.c.bf16 %v160_v48, %v159_v47 }
  0x1c   :  { %1672 = vmatprep.subr.bf16.mxu1 %v1671_v18  ;;  %v171_v50 = vld [vmem:[%s2548_s1 + $0x300] sm:$0xff]  ;;  %v54_v55 = vld [vmem:[%s2547_s0 + $0x38] sm:$0xff]  ;;  %v144_v58 = vld [vmem:[%s2548_s1 + $0x228] sm:$0xff] }
  0x1d   :  { %1642 = vmatpush3.bf16.msra.mxu0 %v1641_v24  ;;  %v143_v54 = vld [vmem:[%s2548_s1 + $0x220] sm:$0xff]  ;;  %v1711_v56 = vpack.c.bf16 %v172_v52, %v171_v50  ;;  %v161_v59 = vld [vmem:[%s2548_s1 + $0x2b0] sm:$0xff]  ;;  %v56_v60 = vld [vmem:[%s2547_s0 + $0x48] sm:$0xff] }
  0x1e   :  { %1644 = vmatprep.subr.bf16.mxu0 %v1643_v26  ;;  %v162_v61 = vld [vmem:[%s2548_s1 + $0x2b8] sm:$0xff]  ;;  %v173_v63 = vld [vmem:[%s2548_s1 + $0x310] sm:$0xff]  ;;  %v64_v0 = vld [vmem:[%s2547_s0 + $0x88] sm:$0xff]  ;;  %v1689_v2 = vpack.c.bf16 %v144_v58, %v143_v54 }
  0x1f   :  { %1674 = vmatpush3.bf16.msra.mxu1 %v1673_v25  ;;  %v62_v62 = vld [vmem:[%s2547_s0 + $0x78] sm:$0xff]  ;;  %v145_v3 = vld [vmem:[%s2548_s1 + $0x230] sm:$0xff]  ;;  %v1691_v6 = vpack.c.bf16 %v162_v61, %v161_v59  ;;  %v163_v8 = vld [vmem:[%s2548_s1 + $0x2c0] sm:$0xff] }
  0x20   :  { %1676 = vmatprep.subr.bf16.mxu1 %v1675_v30  ;;  %v174_v1 = vld [vmem:[%s2548_s1 + $0x318] sm:$0xff]  ;;  %v61_v4 = vld [vmem:[%s2547_s0 + $0x70] sm:$0xff]  ;;  %v63_v9 = vld [vmem:[%s2547_s0 + $0x80] sm:$0xff] }
  0x21   :  { %1646 = vmatpush3.bf16.msra.mxu0 %v1645_v34  ;;  %v1715_v5 = vpack.c.bf16 %v174_v1, %v173_v63  ;;  %v146_v7 = vld [vmem:[%s2548_s1 + $0x238] sm:$0xff]  ;;  %v164_v10 = vld [vmem:[%s2548_s1 + $0x2c8] sm:$0xff]  ;;  %v69_v11 = vld [vmem:[%s2547_s0 + $0xb0] sm:$0xff] }
  0x22   :  { %1680 = vmatprep.subr.bf16.mxu0 %v1679_v36 }
  0x23   :  { %1678 = vmatpush3.bf16.msra.mxu1 %v1677_v35 }
  0x24   :  { %262 = vmatmul.mubr.f32.vlgmr.msra.gmra.mrb[0].mxu0 %v47_v41  ;;  %1712 = vmatprep.subr.bf16.mxu1 %v1711_v56 }
  0x25   :  { %1682 = vmatpush3.bf16.msra.mxu0 %v1681_v42  ;;  %266 = vmatprep.mubr.f32.mxu0 %v55_v49 }
  0x26   :  { %347 = vmatmul.mubr.f32.vlgmr.msra.gmra.mrb[0].mxu1 %v49_v43  ;;  %1684 = vmatprep.subr.bf16.mxu0 %v1683_v44 }
  0x27   :  { %351 = vmatprep.mubr.f32.mxu1 %v57_v51  ;;  %1714 = vmatpush3.bf16.msra.mxu1 %v1711_v56 }
  0x28   :  { %267 = vmatmul.mubr.f32.gmra.mrb[2].mxu0 %v54_v55  ;;  %1716 = vmatprep.subr.bf16.mxu1 %v1715_v5 }
  0x29   :  { %1686 = vmatpush3.bf16.msra.mxu0 %v1685_v53  ;;  %271 = vmatprep.mubr.f32.mxu0 %v62_v62 }
  0x2a   :  { %352 = vmatmul.mubr.f32.gmra.mrb[2].mxu1 %v56_v60  ;;  %1688 = vmatprep.subr.bf16.mxu0 %v1687_v57 }
  0x2b   :  { %356 = vmatprep.mubr.f32.mxu1 %v64_v0 }
  0x2c   :  { %20 = vsyncpa [#allocation3], 0  ;;  %272 = vmatmul.mubr.f32.gmra.mrb[4].mxu0 %v61_v4  ;;  %v71_v12 = vld [vmem:[%s2547_s0 + $0xc0] sm:$0xff]  ;;  %1718 = vmatpush3.bf16.msra.mxu1 %v1715_v5  ;;  %v1693_v13 = vpack.c.bf16 %v146_v7, %v145_v3  ;;  %v68_v14 = vld [vmem:[%s2547_s0 + $0xa8] sm:$0xff]  ;;  %v1695_v15 = vpack.c.bf16 %v164_v10, %v163_v8  ;;  %vm184_vm0 = vcmask 261120   ;;  %v1831_v53 = vmov 0.0|0.0  }
  0x2d   :  { %1690 = vmatpush3.bf16.msra.mxu0 %v1689_v2  ;;  %v147_v16 = vld [vmem:[%s2548_s1 + $0x240] sm:$0xff]  ;;  %v148_v17 = vld [vmem:[%s2548_s1 + $0x248] sm:$0xff]  ;;  %276 = vmatprep.mubr.f32.mxu0 %v69_v11  ;;  %v70_v18 = vld [vmem:[%s2547_s0 + $0xb8] sm:$0xff]  ;;  %vm1832_vm1 = vmmov 0   ;;  %v1833_v63 = vmov 0.0   ;;  %vm537_vm2 = vcmask 523264  }
  0x2e   :  { %357 = vmatmul.mubr.f32.gmra.mrb[4].mxu1 %v63_v9  ;;  %1692 = vmatprep.subr.bf16.mxu0 %v1691_v6  ;;  %v165_v19 = vld [vmem:[%s2548_s1 + $0x2d0] sm:$0xff]  ;;  %v166_v20 = vld [vmem:[%s2548_s1 + $0x2d8] sm:$0xff]  ;;  %v52_v21 = vld [vmem:[%s2547_s0 + $0x28] sm:$0xff]  ;;  %v1697_v23 = vpack.c.bf16 %v148_v17, %v147_v16  ;;  %vm1052_vm3 = vcmask 1043456   ;;  %vm1215_vm4 = vcmask 156672   ;;  %vm1048_vm5 = vcmask 162816  }
  0x2f   :  { %361 = vmatprep.mubr.f32.mxu1 %v71_v12  ;;  %v53_v22 = vld [vmem:[%s2547_s0 + $0x30] sm:$0xff]  ;;  %v1699_v24 = vpack.c.bf16 %v166_v20, %v165_v19  ;;  %v150_v26 = vld [vmem:[%s2548_s1 + $0x258] sm:$0xff]  ;;  %v60_v27 = vld [vmem:[%s2547_s0 + $0x68] sm:$0xff]  ;;  %1719 = vmatprep.subr.bf16.mxu1 %v1831_v53  ;;  %s1834_s19 = smov [#allocation2]   ;;  %vm1217_vm6 = vcmask 9216  }
  0x30   :  { %277 = vmatmul.mubr.f32.gmra.mrb[6].mxu0 %v68_v14  ;;  %v149_v25 = vld [vmem:[%s2548_s1 + $0x250] sm:$0xff]  ;;  %v167_v28 = vld [vmem:[%s2548_s1 + $0x2e0] sm:$0xff]  ;;  %v168_v29 = vld [vmem:[%s2548_s1 + $0x2e8] sm:$0xff] }
  0x31   :  { %1694 = vmatpush3.bf16.msra.mxu0 %v1693_v13  ;;  %431 = vmatprep.mubr.f32.mxu0 %v52_v21  ;;  %v67_v30 = vld [vmem:[%s2547_s0 + $0xa0] sm:$0xff]  ;;  %v1701_v31 = vpack.c.bf16 %v150_v26, %v149_v25  ;;  %v1703_v32 = vpack.c.bf16 %v168_v29, %v167_v28  ;;  %v152_v34 = vld [vmem:[%s2548_s1 + $0x268] sm:$0xff]  ;;  %v74_v35 = vld [vmem:[%s2547_s0 + $0xd8] sm:$0xff] }
  0x32   :  { %362 = vmatmul.mubr.f32.gmra.mrb[6].mxu1 %v70_v18  ;;  %1696 = vmatprep.subr.bf16.mxu0 %v1695_v15  ;;  %v151_v33 = vld [vmem:[%s2548_s1 + $0x260] sm:$0xff]  ;;  %v169_v36 = vld [vmem:[%s2548_s1 + $0x2f0] sm:$0xff]  ;;  %v170_v37 = vld [vmem:[%s2548_s1 + $0x2f8] sm:$0xff] }
  0x33   :  { %1486 = vmatprep.mubr.msk.f32.mxu1 %vm184_vm0, %v53_v22  ;;  %v1705_v38 = vpack.c.bf16 %v152_v34, %v151_v33  ;;  %v1707_v39 = vpack.c.bf16 %v170_v37, %v169_v36  ;;  %v153_v40 = vld [vmem:[%s2548_s1 + $0x270] sm:$0xff]  ;;  %v154_v41 = vld [vmem:[%s2548_s1 + $0x278] sm:$0xff]  ;;  %v51_v43 = vld [vmem:[%s2547_s0 + $0x20] sm:$0xff] }
  0x34   :  { %v1709_v42 = vpack.c.bf16 %v154_v41, %v153_v40  ;;  %v59_v44 = vld [vmem:[%s2547_s0 + $0x60] sm:$0xff]  ;;  %v58_v45 = vld [vmem:[%s2547_s0 + $0x58] sm:$0xff]  ;;  %v65_v47 = vld [vmem:[%s2547_s0 + $0x90] sm:$0xff] }
  0x35   :  { %1698 = vmatpush3.bf16.msra.mxu0 %v1697_v23  ;;  %v66_v46 = vld [vmem:[%s2547_s0 + $0x98] sm:$0xff]  ;;  %v73_v48 = vld [vmem:[%s2547_s0 + $0xd0] sm:$0xff]  ;;  %v72_v49 = vld [vmem:[%s2547_s0 + $0xc8] sm:$0xff] }
  0x36   :  { %1487 = vmatmul.mubr.msk.f32.vlgmr.msra.gmra.mrb[8].mxu1 %vm184_vm0, %v60_v27  ;;  %1700 = vmatprep.subr.bf16.mxu0 %v1699_v24  ;;  %v612_v50 = vld [vmem:[%s2552_s5] sm:$0xff]  ;;  %v613_v51 = vld [vmem:[%s2552_s5 + $0x8] sm:$0xff]  ;;  %v614_v54 = vld [vmem:[%s2552_s5 + $0x10] sm:$0xff] }
  0x37   :  { %1489 = vmatprep.mubr.msk.f32.mxu1 %vm184_vm0, %v67_v30  ;;  %v1720_v52 = vpack.c.bf16 %v613_v51, %v612_v50  ;;  %v615_v55 = vld [vmem:[%s2552_s5 + $0x18] sm:$0xff]  ;;  %v616_v57 = vld [vmem:[%s2552_s5 + $0x20] sm:$0xff]  ;;  %v617_v58 = vld [vmem:[%s2552_s5 + $0x28] sm:$0xff] }
  0x38   :  { %v1723_v56 = vpack.c.bf16 %v615_v55, %v614_v54  ;;  %v1726_v59 = vpack.c.bf16 %v617_v58, %v616_v57  ;;  %v618_v60 = vld [vmem:[%s2552_s5 + $0x30] sm:$0xff]  ;;  %v619_v61 = vld [vmem:[%s2552_s5 + $0x38] sm:$0xff]  ;;  %v1237_v1 = vld [vmem:[%s2549_s2] ss:$0 sm:$0xff] }
  0x39   :  { %1702 = vmatpush3.bf16.msra.mxu0 %v1701_v31  ;;  %1721 = vmatpush3.bf16.msra.mxu1 %v1720_v52  ;;  %v1729_v62 = vpack.c.bf16 %v619_v61, %v618_v60  ;;  %v951_v36 = vld [vmem:[%s2554_s7 + $0x8] sm:$0xff]  ;;  %v952_v37 = vld [vmem:[%s2554_s7 + $0x10] sm:$0xff]  ;;  %v953_v40 = vld [vmem:[%s2554_s7 + $0x18] sm:$0xff] }
  0x3a   :  { %1490 = vmatmul.mubr.msk.f32.gmra.mrb[10].mxu1 %vm184_vm0, %v74_v35  ;;  %1704 = vmatprep.subr.bf16.mxu0 %v1703_v32  ;;  %v950_v35 = vld [vmem:[%s2554_s7] sm:$0xff] }
  0x3b   :  { %1722 = vmatprep.subr.bf16.mxu1 %v1831_v53  ;;  %1508 = vmatprep.mubr.msk.f32.mxu1 %vm1832_vm1, %v1833_v63 }
  0x3d   :  { %1706 = vmatpush3.bf16.msra.mxu0 %v1705_v38  ;;  %1724 = vmatpush3.bf16.msra.mxu1 %v1723_v56 }
  0x3e   :  { %1708 = vmatprep.subr.bf16.mxu0 %v1707_v39  ;;  %1725 = vmatprep.subr.bf16.mxu1 %v1831_v53  ;;  %v1768_v39 = vpack.c.bf16 %v951_v36, %v950_v35 }
  0x41   :  { %1710 = vmatpush3.bf16.msra.mxu0 %v1709_v42  ;;  %1727 = vmatpush3.bf16.msra.mxu1 %v1726_v59  ;;  %v1771_v42 = vpack.c.bf16 %v953_v40, %v952_v37 }
  0x42   :  { %1767 = vmatprep.subr.bf16.mxu0 %v1831_v53  ;;  %1728 = vmatprep.subr.bf16.mxu1 %v1831_v53 }
  0x44   :  { %432 = vmatmul.mubr.f32.vlgmr.msra.gmra.mrb[8].mxu0 %v51_v43  ;;  %v954_v43 = vld [vmem:[%s2554_s7 + $0x20] sm:$0xff] }
  0x45   :  { %436 = vmatprep.mubr.f32.mxu0 %v59_v44  ;;  %1730 = vmatpush3.bf16.msra.mxu1 %v1729_v62  ;;  %v955_v44 = vld [vmem:[%s2554_s7 + $0x28] sm:$0xff] }
  0x46   :  { %1731 = vmatprep.subr.bf16.mxu1 %v1831_v53  ;;  %1769 = vmatpush3.bf16.msra.mxu0 %v1768_v39 }
  0x47   :  { %1770 = vmatprep.subr.bf16.mxu0 %v1831_v53 }
  0x48   :  { %437 = vmatmul.mubr.f32.gmra.mrb[10].mxu0 %v58_v45  ;;  %v1774_v45 = vpack.c.bf16 %v955_v44, %v954_v43 }
  0x49   :  { %441 = vmatprep.mubr.f32.mxu0 %v66_v46 }
  0x4a   :  { %1772 = vmatpush3.bf16.msra.mxu0 %v1771_v42 }
  0x4b   :  { %1773 = vmatprep.subr.bf16.mxu0 %v1831_v53 }
  0x4c   :  { %442 = vmatmul.mubr.f32.gmra.mrb[12].mxu0 %v65_v47 }
  0x4d   :  { %446 = vmatprep.mubr.f32.mxu0 %v73_v48 }
  0x4e   :  { %1775 = vmatpush3.bf16.msra.mxu0 %v1774_v45  ;;  %v1242_v45 = vld [vmem:[%s2550_s3] ss:$0 sm:$0xff] }
  0x4f   :  { %1776 = vmatprep.subr.bf16.mxu0 %v1831_v53 }
  0x50   :  { %447 = vmatmul.mubr.f32.gmra.mrb[14].mxu0 %v72_v49 }
  0x51   :  { %1584 = vmatprep.mubr.msk.f32.mxu0 %vm1832_vm1, %v1833_v63 }
  0xf7   :  { %v1312_v0 = vpop.f32.mrb[0].mxu0 }
  0xf8   :  { %v1313_v2 = vpop.f32.mrb[1].mxu0 }
  0xf9   :  { %v1356_v3 = vpop.f32.mrb[0].mxu1  ;;  %v1314_v4 = vadd.f32 %v1313_v2, %v1312_v0 }
  0xfa   :  { %v1357_v5 = vpop.f32.mrb[1].mxu1 }
  0xfb   :  { %v1358_v6 = vadd.f32 %v1357_v5, %v1356_v3  ;;  %v264_v7 = vadd.f32 %v1314_v4, %v1237_v1  ;;  %v1315_v8 = vpop.f32.mrb[2].mxu0 }
  0xfc   :  { %v1316_v9 = vpop.f32.mrb[3].mxu0 }
  0xfd   :  { %v1359_v10 = vpop.f32.mrb[2].mxu1  ;;  %v349_v11 = vadd.f32 %v1358_v6, %v264_v7  ;;  %v1317_v12 = vadd.f32 %v1316_v9, %v1315_v8 }
  0xfe   :  { %v1360_v13 = vpop.f32.mrb[3].mxu1 }
  0xff   :  { %v1361_v14 = vadd.f32 %v1360_v13, %v1359_v10  ;;  %v269_v15 = vadd.f32 %v1317_v12, %v1237_v1  ;;  %v1318_v16 = vpop.f32.mrb[4].mxu0 }
 0x100   :  { %v1319_v17 = vpop.f32.mrb[5].mxu0 }
 0x101   :  { %v1362_v18 = vpop.f32.mrb[4].mxu1  ;;  %v354_v19 = vadd.f32 %v1361_v14, %v269_v15  ;;  %v1320_v20 = vadd.f32 %v1319_v17, %v1318_v16 }
 0x102   :  { %v1363_v21 = vpop.f32.mrb[5].mxu1 }
 0x103   :  { %v1364_v22 = vadd.f32 %v1363_v21, %v1362_v18  ;;  %v274_v23 = vadd.f32 %v1320_v20, %v1237_v1  ;;  %v1321_v24 = vpop.f32.mrb[6].mxu0 }
 0x104   :  { %v1322_v25 = vpop.f32.mrb[7].mxu0 }
 0x105   :  { %v1365_v26 = vpop.f32.mrb[6].mxu1  ;;  %v359_v27 = vadd.f32 %v1364_v22, %v274_v23  ;;  %v1323_v28 = vadd.f32 %v1322_v25, %v1321_v24 }
 0x106   :  { %v1366_v29 = vpop.f32.mrb[7].mxu1 }
 0x107   :  { %v1367_v30 = vadd.f32 %v1366_v29, %v1365_v26  ;;  %v279_v31 = vadd.f32 %v1323_v28, %v1237_v1 }
 0x109   :  { %v1488_v32 = vpop.f32.mrb[8].mxu1  ;;  %v364_v33 = vadd.f32 %v1367_v30, %v279_v31 }
 0x10a   :  { %v518_v34 = vpop.f32.mrb[9].mxu1 }
 0x10d   :  { %v1491_v38 = vpop.f32.mrb[10].mxu1 }
 0x10e   :  { %v528_v41 = vpop.f32.mrb[11].mxu1 }
 0x117   :  { %v1400_v46 = vpop.f32.mrb[8].mxu0 }
 0x118   :  { %v1401_v47 = vpop.f32.mrb[9].mxu0 }
 0x119   :  { %v1402_v48 = vadd.f32 %v1401_v47, %v1400_v46 }
 0x11b   :  { %v1403_v49 = vpop.f32.mrb[10].mxu0  ;;  %v434_v50 = vadd.f32 %v1402_v48, %v349_v11 }
 0x11c   :  { %v1404_v51 = vpop.f32.mrb[11].mxu0 }
 0x11d   :  { %v1405_v52 = vadd.f32 %v1404_v51, %v1403_v49  ;;  %v519_v54 = vadd.f32 %v518_v34, %v434_v50  ;;  %v1243_v50 = vld [vmem:[%s2551_s4] ss:$0 sm:$0xff] }
 0x11f   :  { %v439_v55 = vadd.f32 %v1405_v52, %v354_v19  ;;  %v1406_v56 = vpop.f32.mrb[12].mxu0  ;;  %v553_v59 = vmul.f32 %v519_v54, %v519_v54  ;;  %v538_v62 = vsel %vm537_vm2, %v519_v54, 0.0 }
 0x120   :  { %v1407_v57 = vpop.f32.mrb[13].mxu0 }
 0x121   :  { %v524_v58 = vadd.f32 %v1488_v32, %v439_v55  ;;  %v1408_v60 = vadd.f32 %v1407_v57, %v1406_v56  ;;  %v557_v5 = vsel %vm537_vm2, %v553_v59, 0.0 }
 0x123   :  { %v554_v61 = vmul.f32 %v524_v58, %v524_v58  ;;  %v539_v0 = vsel %vm537_vm2, %v524_v58, 0.0  ;;  %v1409_v1 = vpop.f32.mrb[14].mxu0  ;;  %v444_v2 = vadd.f32 %v1408_v60, %v359_v27 }
 0x124   :  { %v540_v3 = vadd.f32 %v539_v0, %v538_v62  ;;  %v1410_v4 = vpop.f32.mrb[15].mxu0 }
 0x125   :  { %v558_v6 = vsel %vm537_vm2, %v554_v61, 0.0  ;;  %v1411_v7 = vadd.f32 %v1410_v4, %v1409_v1  ;;  %v529_v8 = vadd.f32 %v528_v41, %v444_v2  ;;  %v1246_v1 = vld [vmem:[%s2552_s5 + $0x40] sm:$0xff]  ;;  %v1247_v2 = vld [vmem:[%s2552_s5 + $0x48] sm:$0xff] }
 0x126   :  { %v559_v9 = vadd.f32 %v558_v6, %v557_v5  ;;  %v1732_v5 = vpack.c.bf16 %v1247_v2, %v1246_v1  ;;  %v1130_v1 = vld [vmem:[%s2558_s11 + $0x18] sm:$0xff] }
 0x127   :  { %v449_v10 = vadd.f32 %v1411_v7, %v364_v33  ;;  %v541_v11 = vsel %vm537_vm2, %v529_v8, 0.0  ;;  %v555_v12 = vmul.f32 %v529_v8, %v529_v8  ;;  %v1248_v7 = vld [vmem:[%s2552_s5 + $0x50] sm:$0xff] }
 0x128   :  { %v542_v13 = vadd.f32 %v541_v11, %v540_v3  ;;  %v1251_v11 = vld [vmem:[%s2552_s5 + $0x68] sm:$0xff] }
 0x129   :  { %v534_v14 = vadd.f32 %v1491_v38, %v449_v10  ;;  %v560_v15 = vsel %vm537_vm2, %v555_v12, 0.0  ;;  %v1250_v10 = vld [vmem:[%s2552_s5 + $0x60] sm:$0xff] }
 0x12a   :  { %v561_v16 = vadd.f32 %v560_v15, %v559_v9  ;;  %v1738_v12 = vpack.c.bf16 %v1251_v11, %v1250_v10 }
 0x12b   :  { %v556_v17 = vmul.f32 %v534_v14, %v534_v14  ;;  %v543_v18 = vsel %vm537_vm2, %v534_v14, 0.0 }
 0x12c   :  { %v544_v19 = vadd.f32 %v543_v18, %v542_v13  ;;  %v1252_v13 = vld [vmem:[%s2552_s5 + $0x70] sm:$0xff] }
 0x12d   :  { %v562_v20 = vsel %vm537_vm2, %v556_v17, 0.0  ;;  %v1256_v17 = vld [vmem:[%s2552_s5 + $0x88] sm:$0xff] }
 0x12e   :  { %v545_v21 = vrot.slane %v544_v19, 4  ;;  %v563_v22 = vadd.f32 %v562_v20, %v561_v16  ;;  %v1255_v16 = vld [vmem:[%s2552_s5 + $0x80] sm:$0xff]  ;;  %v1257_v20 = vld [vmem:[%s2552_s5 + $0x90] sm:$0xff] }
 0x12f   :  { %v1744_v18 = vpack.c.bf16 %v1256_v17, %v1255_v16 }
 0x130   :  { %v546_v23 = vadd.f32 %v545_v21, %v544_v19  ;;  %v564_v24 = vrot.slane %v563_v22, 4  ;;  %v1258_v21 = vld [vmem:[%s2552_s5 + $0x98] sm:$0xff] }
 0x132   :  { %v547_v25 = vrot.slane %v546_v23, 2  ;;  %v565_v26 = vadd.f32 %v564_v24, %v563_v22  ;;  %v1747_v22 = vpack.c.bf16 %v1258_v21, %v1257_v20  ;;  %v1260_v24 = vld [vmem:[%s2552_s5 + $0xa8] sm:$0xff] }
 0x134   :  { %v548_v27 = vadd.f32 %v547_v25, %v546_v23  ;;  %v566_v28 = vrot.slane %v565_v26, 2  ;;  %v1259_v23 = vld [vmem:[%s2552_s5 + $0xa0] sm:$0xff] }
 0x135   :  { %v1750_v25 = vpack.c.bf16 %v1260_v24, %v1259_v23 }
 0x136   :  { %v549_v29 = vrot.slane %v548_v27, 1  ;;  %v567_v30 = vadd.f32 %v566_v28, %v565_v26  ;;  %v1261_v26 = vld [vmem:[%s2552_s5 + $0xb0] sm:$0xff] }
 0x138   :  { %v550_v31 = vadd.f32 %v549_v29, %v548_v27  ;;  %v568_v32 = vrot.slane %v567_v30, 1  ;;  %v1262_v27 = vld [vmem:[%s2552_s5 + $0xb8] sm:$0xff]  ;;  %v1264_v29 = vld [vmem:[%s2552_s5 + $0xc0] sm:$0xff] }
 0x139   :  { %v1753_v28 = vpack.c.bf16 %v1262_v27, %v1261_v26 }
 0x13a   :  { %v552_v33 = vmul.f32 0.03125, %v550_v31  ;;  %v569_v34 = vadd.f32 %v568_v32, %v567_v30  ;;  %v1265_v30 = vld [vmem:[%s2552_s5 + $0xc8] sm:$0xff] }
 0x13b   :  { %v1756_v31 = vpack.c.bf16 %v1265_v30, %v1264_v29 }
 0x13c   :  { %v570_v35 = vmul.f32 0.03125, %v569_v34  ;;  %v571_v36 = vmul.f32 %v552_v33, %v552_v33  ;;  %v574_v37 = vsub.f32 %v519_v54, %v552_v33  ;;  %v575_v38 = vsub.f32 %v524_v58, %v552_v33  ;;  %v1267_v34 = vld [vmem:[%s2552_s5 + $0xd8] sm:$0xff] }
 0x13d   :  { %v576_v39 = vsub.f32 %v529_v8, %v552_v33  ;;  %v577_v40 = vsub.f32 %v534_v14, %v552_v33  ;;  %v1249_v8 = vld [vmem:[%s2552_s5 + $0x58] sm:$0xff]  ;;  %v1266_v33 = vld [vmem:[%s2552_s5 + $0xd0] sm:$0xff] }
 0x13e   :  { %v572_v41 = vsub.f32 %v570_v35, %v571_v36  ;;  %v1735_v9 = vpack.c.bf16 %v1249_v8, %v1248_v7  ;;  %v1253_v14 = vld [vmem:[%s2552_s5 + $0x78] sm:$0xff]  ;;  %v1759_v35 = vpack.c.bf16 %v1267_v34, %v1266_v33  ;;  %v1268_v36 = vld [vmem:[%s2552_s5 + $0xe0] sm:$0xff] }
 0x13f   :  { %v1741_v15 = vpack.c.bf16 %v1253_v14, %v1252_v13  ;;  %v1275_v8 = vld [vmem:[%s2557_s10] ss:$0 sm:$0xff] }
 0x140   :  { %v573_v42 = vmax.f32 %v572_v41, 0.0 }
 0x142   :  { %v578_v43 = vadd.f32 1e-05, %v573_v42 }
 0x144   :  { %1805 = vrsqrt.f32 %v578_v43  ;;  %v956_v43 = vld [vmem:[%s2554_s7 + $0x30] sm:$0xff] }
 0x14e   :  { %v1806_v44 = vpop.eup %1805 }
 0x14f   :  { %v580_v46 = vmul.f32 %v1806_v44, %v574_v37  ;;  %v581_v47 = vmul.f32 %v1806_v44, %v575_v38  ;;  %v582_v48 = vmul.f32 %v1806_v44, %v576_v39  ;;  %v583_v49 = vmul.f32 %v1806_v44, %v577_v40  ;;  %v1269_v37 = vld [vmem:[%s2552_s5 + $0xe8] sm:$0xff]  ;;  %v1270_v39 = vld [vmem:[%s2552_s5 + $0xf0] sm:$0xff]  ;;  %v1271_v40 = vld [vmem:[%s2552_s5 + $0xf8] sm:$0xff] }
 0x150   :  { %v1762_v38 = vpack.c.bf16 %v1269_v37, %v1268_v36  ;;  %v1765_v41 = vpack.c.bf16 %v1271_v40, %v1270_v39  ;;  %v957_v44 = vld [vmem:[%s2554_s7 + $0x38] sm:$0xff] }
 0x151   :  { %v590_v51 = vmul.f32 %v1242_v45, %v580_v46  ;;  %v591_v52 = vmul.f32 %v1242_v45, %v581_v47  ;;  %v592_v54 = vmul.f32 %v1242_v45, %v582_v48  ;;  %v593_v55 = vmul.f32 %v1242_v45, %v583_v49  ;;  %v1245_v46 = vld [vmem:[%s2553_s6] ss:$0 sm:$0xff]  ;;  %v1039_v48 = vld [vmem:[%s2556_s9 + $0x8] sm:$0xff]  ;;  %s1227_s6 = sshll.u32 %s1834_s19, 4  ;;  %s1228_s6 = int_to_ptr.vmem [resolvable:$true] %s1227_s6 }
 0x152   :  { %v1777_v45 = vpack.c.bf16 %v957_v44, %v956_v43  ;;  %v1038_v47 = vld [vmem:[%s2556_s9] sm:$0xff]  ;;  %p1812_p1 = scmp.lt.s32.totalorder %s1228_s6, %s1228_s6 }
 0x153   :  { %v600_v56 = vadd.f32 %v1243_v50, %v590_v51  ;;  %v601_v57 = vadd.f32 %v1243_v50, %v591_v52  ;;  %v602_v58 = vadd.f32 %v1243_v50, %v592_v54  ;;  %v603_v59 = vadd.f32 %v1243_v50, %v593_v55  ;;  %v1040_v55 = vld [vmem:[%s2556_s9 + $0x10] sm:$0xf] }
 0x154   :  { %1778 = vmatpush3.bf16.msra.mxu0 %v1777_v45  ;;  %v1780_v52 = vpack.c.bf16 %v1039_v48, %v1038_v47 }
 0x155   :  { %v604_v60 = vmax.f32 %v600_v56, 0.0  ;;  %v605_v61 = vmax.f32 %v601_v57, 0.0  ;;  %v606_v62 = vmax.f32 %v602_v58, 0.0  ;;  %v607_v0 = vmax.f32 %v603_v59, 0.0  ;;  %1779 = vmatprep.subr.bf16.mxu0 %v1831_v53  ;;  %v1127_v56 = vld [vmem:[%s2558_s11] sm:$0xff]  ;;  %v1128_v57 = vld [vmem:[%s2558_s11 + $0x8] sm:$0xff] }
 0x156   :  { %v1273_v58 = vld [vmem:[%s2555_s8] ss:$0 sm:$0xff] }
 0x157   :  { %v608_v3 = vmax.f32 %v604_v60, %v605_v61  ;;  %v609_v4 = vmax.f32 %v606_v62, %v607_v0  ;;  %v1783_v60 = vpack.c.bf16 %v1128_v57, %v1127_v56  ;;  %v1129_v0 = vld [vmem:[%s2558_s11 + $0x10] sm:$0xff] }
 0x158   :  { %v1786_v2 = vpack.c.bf16 %v1130_v1, %v1129_v0 }
 0x159   :  { %v2376_v6 = vmax.f32 %v608_v3, %v609_v4  ;;  %v1131_v3 = vld [vmem:[%s2558_s11 + $0x20] sm:$0xff]  ;;  %v1132_v4 = vld [vmem:[%s2558_s11 + $0x28] sm:$0xff] }
 0x15b   :  { %1509 = vmatmul.mubr.msk.f32.vlgmr.msra.gmra.mrb[12].mxu1 %vm537_vm2, %v2376_v6  ;;  %v709_v19 = vrot.slane %v2376_v6, 2  ;;  %v792_v32 = vrot.slane %v2376_v6, 4  ;;  %v875_v42 = vrot.slane %v2376_v6, 6  ;;  %v1134_v6 = vld [vmem:[%s2558_s11 + $0x38] sm:$0xff] }
 0x15c   :  { %1733 = vmatpush3.bf16.msra.mxu1 %v1732_v5  ;;  %1527 = vmatprep.mubr.msk.f32.mxu1 %vm1832_vm1, %v1833_v63  ;;  %v1789_v5 = vpack.c.bf16 %v1132_v4, %v1131_v3 }
 0x15d   :  { %1734 = vmatprep.subr.bf16.mxu1 %v1831_v53 }
 0x160   :  { %1736 = vmatpush3.bf16.msra.mxu1 %v1735_v9 }
 0x161   :  { %1737 = vmatprep.subr.bf16.mxu1 %v1831_v53 }
 0x164   :  { %1739 = vmatpush3.bf16.msra.mxu1 %v1738_v12 }
 0x165   :  { %1740 = vmatprep.subr.bf16.mxu1 %v1831_v53 }
 0x168   :  { %1742 = vmatpush3.bf16.msra.mxu1 %v1741_v15 }
 0x169   :  { %1743 = vmatprep.subr.bf16.mxu1 %v1831_v53 }
 0x16b   :  { %1528 = vmatmul.mubr.msk.f32.vlgmr.msra.gmra.mrb[12].mxu1 %vm537_vm2, %v709_v19 }
 0x16c   :  { %1745 = vmatpush3.bf16.msra.mxu1 %v1744_v18  ;;  %1546 = vmatprep.mubr.msk.f32.mxu1 %vm1832_vm1, %v1833_v63 }
 0x16d   :  { %1746 = vmatprep.subr.bf16.mxu1 %v1831_v53 }
 0x170   :  { %1748 = vmatpush3.bf16.msra.mxu1 %v1747_v22 }
 0x171   :  { %1749 = vmatprep.subr.bf16.mxu1 %v1831_v53 }
 0x174   :  { %1751 = vmatpush3.bf16.msra.mxu1 %v1750_v25 }
 0x175   :  { %1752 = vmatprep.subr.bf16.mxu1 %v1831_v53 }
 0x178   :  { %1754 = vmatpush3.bf16.msra.mxu1 %v1753_v28 }
 0x179   :  { %1755 = vmatprep.subr.bf16.mxu1 %v1831_v53 }
 0x17b   :  { %1547 = vmatmul.mubr.msk.f32.vlgmr.msra.gmra.mrb[12].mxu1 %vm537_vm2, %v792_v32 }
 0x17c   :  { %1757 = vmatpush3.bf16.msra.mxu1 %v1756_v31  ;;  %1565 = vmatprep.mubr.msk.f32.mxu1 %vm1832_vm1, %v1833_v63 }
 0x17d   :  { %1758 = vmatprep.subr.bf16.mxu1 %v1831_v53 }
 0x180   :  { %1760 = vmatpush3.bf16.msra.mxu1 %v1759_v35 }
 0x181   :  { %1761 = vmatprep.subr.bf16.mxu1 %v1831_v53 }
 0x184   :  { %1763 = vmatpush3.bf16.msra.mxu1 %v1762_v38 }
 0x185   :  { %1764 = vmatprep.subr.bf16.mxu1 %v1831_v53 }
 0x188   :  { %1766 = vmatpush3.bf16.msra.mxu1 %v1765_v41 }
 0x18b   :  { %1566 = vmatmul.mubr.msk.f32.vlgmr.msra.gmra.mrb[12].mxu1 %vm537_vm2, %v875_v42 }
 0x25e   :  { %v944_v49 = vpop.f32.mrb[12].mxu1 }
 0x25f   :  { %v1794_v50 = vadd.f32 %v1245_v46, %v944_v49  ;;  %v1567_v51 = vpop.f32.mrb[13].mxu1 }
 0x261   :  { %v949_v54 = vmax.f32 %v1794_v50, 0.0 }
 0x263   :  { %1585 = vmatmul.mubr.msk.f32.vlgmr.msra.gmra.mrb[16].mxu0 %vm537_vm2, %v949_v54 }
 0x264   :  { %1781 = vmatpush3.bf16.msra.mxu0 %v1780_v52  ;;  %1593 = vmatprep.mubr.msk.f32.mxu0 %vm1832_vm1, %v1833_v63 }
 0x265   :  { %1591 = vmatprep.subr.mxu0 %v1833_v63 }
 0x268   :  { %1592 = vmatpush3.msk.msra.mxu0 %vm1052_vm3, %v1040_v55 }
 0x269   :  { %1782 = vmatprep.subr.bf16.mxu0 %v1831_v53 }
 0x336   :  { %v1034_v59 = vpop.f32.mrb[16].mxu0 }
 0x337   :  { %v1035_v61 = vadd.f32 %v1273_v58, %v1034_v59  ;;  %v1586_v62 = vpop.f32.mrb[17].mxu0 }
 0x339   :  { %1216 = vst.msk [vmem:[%s2560_s13] sm:$0x3] %vm1215_vm4, %v1035_v61  ;;  %1594 = vmatmul.mubr.msk.f32.vlgmr.msra.gmra.mrb[18].mxu0 %vm1048_vm5, %v1035_v61 }
 0x33a   :  { %1784 = vmatpush3.bf16.msra.mxu0 %v1783_v60  ;;  %1612 = vmatprep.mubr.msk.f32.mxu0 %vm1832_vm1, %v1833_v63  ;;  %v1133_v63 = vld [vmem:[%s2558_s11 + $0x30] sm:$0xff]  ;;  %s1807_s11 = scalar_lea.vmem %s1228_s6, 32 }
 0x33b   :  { %1785 = vmatprep.subr.bf16.mxu0 %v1831_v53  ;;  %v1792_v7 = vpack.c.bf16 %v1134_v6, %v1133_v63  ;;  %p1808_p0 = scmp.ne.s32.totalorder %s1228_s6, %s1807_s11  ;;  %p1813_p2 = scmp.lt.s32.totalorder %s1807_s11, %s1807_s11 }
 0x33d   :  { %p1814_p3 = por %p1813_p2, %p1812_p1 }
 0x33e   :  { %1787 = vmatpush3.bf16.msra.mxu0 %v1786_v2 }
 0x33f   :  { %1788 = vmatprep.subr.bf16.mxu0 %v1831_v53  ;;  %p1815_p4 = pnand %p1814_p3, %p1808_p0 }
 0x342   :  { %1790 = vmatpush3.bf16.msra.mxu0 %v1789_v5 }
 0x343   :  { %1791 = vmatprep.subr.bf16.mxu0 %v1831_v53  ;;  %v1278_v53 = vld [vmem:[%s2559_s12] ss:$0 sm:$0xff] }
 0x346   :  { %1793 = vmatpush3.bf16.msra.mxu0 %v1792_v7 }
 0x40c   :  { %v1122_v9 = vpop.f32.mrb[18].mxu0 }
 0x40d   :  { %v1123_v10 = vadd.f32 %v1275_v8, %v1122_v9  ;;  %v1595_v11 = vpop.f32.mrb[19].mxu0 }
 0x40f   :  { %v1126_v12 = vmax.f32 %v1123_v10, 0.0 }
 0x411   :  { %1613 = vmatmul.mubr.msk.f32.vlgmr.msra.gmra.mrb[20].mxu0 %vm537_vm2, %v1126_v12 }
 0x4e4   :  { %v1211_v13 = vpop.f32.mrb[20].mxu0 }
 0x4e5   :  { %v1212_v14 = vadd.f32 %v1278_v53, %v1211_v13  ;;  %v1614_v15 = vpop.f32.mrb[21].mxu0 }
 0x4e7   :  { %1218 = vst.msk [vmem:[#allocation2] sm:$0x3] %vm1217_vm6, %v1212_v14 }
 0x4e8   :  { %1818 = shalt.err (!%p1815_p4)
}
 0x4e9   :  { %s1819_s20 = scalar_lea.hbm %s2561_s14, 32 }
 0x4ea   :  { %p1820_p5 = scmp.ne.s32.totalorder %s2561_s14, %s1819_s20  ;;  %p1823_p6 = scmp.lt.u32.totalorder %s1819_s20, %s2561_s14 }
 0x4ec   :  { %p1825_p7 = pnand %p1823_p6, %p1820_p5 }
 0x4ee   :  { %1828 = shalt.err (!%p1825_p7)
}
 0x4ef   :  { %1230 = dma.vmem_to_hbm [thread:$0]  %s1228_s6, 32, %s2561_s14, [#allocation3]  }
 0x4f0   :  { %1829 = dma.done.wait [#allocation3], 32  }
 0x4f1   :  { %1830 = vsyncadd [#allocation3], 4294967264 }
 0x4f2   :  { %1236 = vsyncpa [#allocation3], 1 }

</bundles_post_ra>
